<compile_context>
chip_gen: v7x
topology: tpu7x:2x2x1
jax: 0.10.0
libtpu: 0.0.40
codegen_flags: <defaults>
</compile_context>

<pallas_src>
import numpy as np
import jax
import jax.numpy as jnp
from jax.experimental import pallas as pl
from jax.experimental.pallas import tpu as pltpu

# ---------------------------------------------------------------------------
# Module constants (mirroring PillarNeXtFeatureNet defaults, 7-feature radar)
# ---------------------------------------------------------------------------
VOXEL_SIZE = np.array([0.2, 0.2, 4.0], dtype=np.float64)
PC_RANGE = np.array([0.0, -40.0, -3.0, 70.4, 40.0, 1.0], dtype=np.float64)
IN_CH = 13          # 7 raw radar features + 3 f_cluster + 3 f_center
FEAT_OUT = 64       # feat_channels = (64,), single PFN layer, last_layer=True
BN_EPS = 1e-3

TN_PTS = 1024       # points per tile (all kernels)
TP_SUM = 512        # pillars per tile (lane axis) in the pillar-sum kernel (%128==0)
TP_MAX = 64         # pillars per tile (sublane axis) in the scatter-max kernel
NEG_INF = float("-inf")
VMEM_LIMIT_BYTES = 32 * 1024 * 1024


def _round_up(x, m):
    return ((x + m - 1) // m) * m


# ---------------------------------------------------------------------------
# Kernel 1: per-pillar sum of [x, y, z, 1, 0, 0, 0, 0]  (-> scatter_mean of xyz)
# one-hot matmul on the MXU; lane-dense (8, Ppad) accumulator, pillar axis tiled
# and parallel, point axis last (reduction, accumulator-resident).
# ---------------------------------------------------------------------------
def _pillar_sum_kernel(inv_ref, xyz1_ref, out_ref):
    @pl.when(pl.program_id(1) == 0)
    def _():
        out_ref[...] = jnp.zeros(out_ref.shape, out_ref.dtype)

    inv = inv_ref[...]                                             # (TN_PTS, 1), -1 == pad
    base = pl.program_id(0) * TP_SUM
    q_ids = base + jax.lax.broadcasted_iota(jnp.int32, (1, TP_SUM), 1)
    onehot = (inv == q_ids).astype(jnp.float32)                    # (TN_PTS, TP_SUM)
    # out[c, p] += sum_n xyz1[n, c] * onehot[n, p]
    out_ref[...] += jax.lax.dot_general(
        xyz1_ref[...], onehot,
        dimension_numbers=(((0,), (0,)), ((), ())),
        preferred_element_type=jnp.float32)                        # (8, TP_SUM)


def pillar_xyz_mean(xyz1, inv_col, num_pillars):
    npad = xyz1.shape[0]
    ppad = _round_up(max(num_pillars, 1), TP_SUM)
    sums = pl.pallas_call(
        _pillar_sum_kernel,
        out_shape=jax.ShapeDtypeStruct((8, ppad), jnp.float32),
        grid=(ppad // TP_SUM, npad // TN_PTS),
        in_specs=[pl.BlockSpec((TN_PTS, 1), lambda p, n: (n, 0)),
                  pl.BlockSpec((TN_PTS, 8), lambda p, n: (n, 0))],
        out_specs=pl.BlockSpec((8, TP_SUM), lambda p, n: (0, p)),
        compiler_params=pltpu.CompilerParams(
            dimension_semantics=("parallel", "arbitrary"),
            vmem_limit_bytes=VMEM_LIMIT_BYTES),
    )(inv_col, xyz1)
    # rows 0..2 = sum(xyz), row 3 = point count (>=1 for every real pillar).
    return (sums[:3, :num_pillars] / sums[3:4, :num_pillars]).T    # (P, 3)


# ---------------------------------------------------------------------------
# Kernel 2: PFN layer  y = relu( BN( x @ W ) )   (BN folded, inference mode)
# ---------------------------------------------------------------------------
# TODO(synk): BatchNorm1d uses running statistics (eval mode) folded into the
#             matmul; training-mode batch stats would need a global reduce.
def _pfn_linear_kernel(x_ref, w_ref, b_ref, y_ref):
    z = jnp.dot(x_ref[...], w_ref[...], preferred_element_type=jnp.float32)
    y_ref[...] = jnp.maximum(z + b_ref[...], 0.0)


def pfn_forward(x_padded, w_folded, b_folded):
    npad = x_padded.shape[0]
    return pl.pallas_call(
        _pfn_linear_kernel,
        out_shape=jax.ShapeDtypeStruct((npad, FEAT_OUT), jnp.float32),
        grid=(npad // TN_PTS,),
        in_specs=[pl.BlockSpec((TN_PTS, IN_CH), lambda i: (i, 0)),
                  pl.BlockSpec((IN_CH, FEAT_OUT), lambda i: (0, 0)),
                  pl.BlockSpec((1, FEAT_OUT), lambda i: (0, 0))],
        out_specs=pl.BlockSpec((TN_PTS, FEAT_OUT), lambda i: (i, 0)),
        compiler_params=pltpu.CompilerParams(
            dimension_semantics=("parallel",),
            vmem_limit_bytes=VMEM_LIMIT_BYTES),
    )(x_padded, w_folded, b_folded)   # padded rows carry inv == -1 downstream


# ---------------------------------------------------------------------------
# Kernel 3: scatter_max over pillars (torch_scatter.scatter_max equivalent)
# grid = (pillar tiles [parallel], point tiles [reduction, last]).
# ---------------------------------------------------------------------------
def _scatter_max_kernel(inv_ref, y_ref, out_ref):
    @pl.when(pl.program_id(1) == 0)
    def _():
        out_ref[...] = jnp.full(out_ref.shape, NEG_INF, out_ref.dtype)

    inv = inv_ref[...]                                 # (TN_PTS, 1)
    y = y_ref[...]                                     # (TN_PTS, FEAT_OUT)
    base = pl.program_id(0) * TP_MAX
    # Merge candidates directly into the resident output, 8 aligned rows at a time.
    for q0 in range(0, TP_MAX, 8):
        rows = [jnp.max(jnp.where(inv == (base + q0 + r), y, NEG_INF),
                        axis=0, keepdims=True) for r in range(8)]
        blk = jnp.concatenate(rows, axis=0)            # (8, FEAT_OUT)
        out_ref[q0:q0 + 8, :] = jnp.maximum(out_ref[q0:q0 + 8, :], blk)


def scatter_max(y_padded, inv_col, num_pillars):
    npad = y_padded.shape[0]
    ppad = _round_up(max(num_pillars, 1), TP_MAX)
    out = pl.pallas_call(
        _scatter_max_kernel,
        out_shape=jax.ShapeDtypeStruct((ppad, FEAT_OUT), jnp.float32),
        grid=(ppad // TP_MAX, npad // TN_PTS),
        in_specs=[pl.BlockSpec((TN_PTS, 1), lambda p, n: (n, 0)),
                  pl.BlockSpec((TN_PTS, FEAT_OUT), lambda p, n: (n, 0))],
        out_specs=pl.BlockSpec((TP_MAX, FEAT_OUT), lambda p, n: (p, 0)),
        compiler_params=pltpu.CompilerParams(
            dimension_semantics=("parallel", "arbitrary"),
            vmem_limit_bytes=VMEM_LIMIT_BYTES),
    )(inv_col, y_padded)
    return out[:num_pillars]


# ---------------------------------------------------------------------------
# Host-side voxelization glue (PillarNet): range mask + unique pillar indices.
# Data-dependent shapes -> done with concrete host numpy (not Pallas).
# ---------------------------------------------------------------------------
def voxelize(batch_points_np):
    grid_size = np.round((PC_RANGE[3:] - PC_RANGE[:3]) / VOXEL_SIZE).astype(np.int64)
    vs = VOXEL_SIZE.astype(np.float32)
    pr = PC_RANGE.astype(np.float32)
    coords_f = (batch_points_np[:, 1:4] - pr[:3]) / vs
    mask = ((coords_f[:, 0] >= 0) & (coords_f[:, 0] < grid_size[0]) &
            (coords_f[:, 1] >= 0) & (coords_f[:, 1] < grid_size[1]))
    pts = batch_points_np[mask]
    coords_f = coords_f[mask]
    coords_i = coords_f.astype(np.int64)          # trunc toward zero == torch .long()
    batch_idx = pts[:, 0:1].astype(np.int64)
    pidx = np.concatenate([batch_idx, coords_i[:, :2]], axis=1)
    unq, unq_inv = np.unique(pidx, axis=0, return_inverse=True)
    return pts, coords_i, unq.astype(np.int32), unq_inv.reshape(-1).astype(np.int32), grid_size


# ---------------------------------------------------------------------------
# Full forward
# ---------------------------------------------------------------------------
def pillarnext_feature_net(points_list, params):
    # batch-id prepend + concat (glue)
    batch_points = []
    for i, p in enumerate(points_list):
        p = np.asarray(p, dtype=np.float32)
        bidx = np.full((p.shape[0], 1), float(i), dtype=np.float32)
        batch_points.append(np.concatenate([bidx, p], axis=1))
    batch_points = np.concatenate(batch_points, axis=0)

    pts, coords_i, unq, unq_inv, grid_size = voxelize(batch_points)
    n = pts.shape[0]
    num_pillars = unq.shape[0]
    npad = _round_up(max(n, 1), TN_PTS)

    xyz = jnp.asarray(pts[:, 1:4], jnp.float32)
    feats_raw = jnp.asarray(pts[:, 1:], jnp.float32)          # (N, 7)
    inv = jnp.asarray(unq_inv, jnp.int32)

    # Padded per-point buffers built once and shared by kernels 1 and 3.
    inv_col = jnp.full((npad, 1), -1, jnp.int32).at[:n, 0].set(inv)
    xyz1 = (jnp.zeros((npad, 8), jnp.float32)
            .at[:n, :3].set(xyz)
            .at[:n, 3].set(1.0))

    # scatter_mean of xyz over pillars (Pallas kernel 1)
    mean = pillar_xyz_mean(xyz1, inv_col, num_pillars)        # (P, 3)
    f_cluster = xyz - mean[inv]

    vs = jnp.asarray(VOXEL_SIZE, jnp.float32)
    pr = jnp.asarray(PC_RANGE, jnp.float32)
    f_center = xyz - (jnp.asarray(coords_i, jnp.float32) * vs + vs / 2.0 + pr[:3])

    features = jnp.concatenate([feats_raw, f_cluster, f_center], axis=-1)   # (N, 13)
    x_padded = jnp.zeros((npad, IN_CH), jnp.float32).at[:n].set(features)

    # PFN layer (Pallas kernel 2) + pillar max pooling (Pallas kernel 3)
    y = pfn_forward(x_padded, params["w_folded"], params["b_folded"])
    feat_max = scatter_max(y, inv_col, num_pillars)           # (P, 64)

    coords = jnp.asarray(unq[:, [0, 2, 1]], jnp.int32)        # [batch, vy, vx]
    aux = {"y": y, "inv": inv, "n": n, "num_pillars": num_pillars,
           "mean": mean, "xyz": xyz}
    return feat_max, coords, jnp.asarray(grid_size[[1, 0]]), aux


# ---------------------------------------------------------------------------
# Deterministic parameter init (Linear(13 -> 64, bias=False) + BN1d(64), folded)
# ---------------------------------------------------------------------------
def init_params(key):
    kw, kg, kb, km, kv = jax.random.split(key, 5)
    W = 0.1 * jax.random.normal(kw, (IN_CH, FEAT_OUT), jnp.float32)
    gamma = 1.0 + 0.1 * jax.random.normal(kg, (FEAT_OUT,), jnp.float32)
    beta = 0.1 * jax.random.normal(kb, (FEAT_OUT,), jnp.float32)
    running_mean = 0.1 * jax.random.normal(km, (FEAT_OUT,), jnp.float32)
    running_var = jnp.abs(jax.random.normal(kv, (FEAT_OUT,), jnp.float32)) + 0.5
    scale = gamma / jnp.sqrt(running_var + BN_EPS)
    return {
        "w_folded": W * scale[None, :],
        "b_folded": (beta - running_mean * scale)[None, :],
    }


if __name__ == "__main__":
    key = jax.random.PRNGKey(0)
    kp, k1, k2 = jax.random.split(key, 3)
    params = init_params(kp)

    def make_points(k, n):
        ks = jax.random.split(k, 7)
        x = jax.random.uniform(ks[0], (n,), minval=-2.0, maxval=72.0)   # some out of range
        y = jax.random.uniform(ks[1], (n,), minval=-42.0, maxval=42.0)
        z = jax.random.uniform(ks[2], (n,), minval=-3.0, maxval=1.0)
        rcs = jax.random.normal(ks[3], (n,))
        vr = jax.random.normal(ks[4], (n,))
        vrc = jax.random.normal(ks[5], (n,))
        t = jax.random.uniform(ks[6], (n,))
        return jnp.stack([x, y, z, rcs, vr, vrc, t], axis=1).astype(jnp.float32)

    points = [make_points(k1, 96), make_points(k2, 64)]   # batch of 2 radar clouds, 7 feats

    feat_max, coords, grid_size, aux = pillarnext_feature_net(points, params)
    jax.block_until_ready(feat_max)

    y, inv, n, num_pillars = aux["y"], aux["inv"], aux["n"], aux["num_pillars"]
    mean, xyz = aux["mean"], aux["xyz"]

    # sanity: kernel scatter_max must match jax segment_max on identical y
    ref_max = jax.ops.segment_max(y[:n], inv, num_segments=num_pillars)
    # sanity: kernel scatter_mean must match segment_sum / counts
    ref_sum = jax.ops.segment_sum(xyz, inv, num_segments=num_pillars)
    ref_cnt = jax.ops.segment_sum(jnp.ones((n,), jnp.float32), inv,
                                  num_segments=num_pillars)
    ref_mean = ref_sum / ref_cnt[:, None]

    assert feat_max.shape == (num_pillars, FEAT_OUT)
    assert coords.shape == (num_pillars, 3)
    assert bool(jnp.all(jnp.isfinite(feat_max)))
    assert bool(jnp.allclose(feat_max, ref_max, atol=1e-5, rtol=1e-5))
    assert bool(jnp.allclose(mean, ref_mean, atol=1e-4, rtol=1e-4))
    assert list(np.asarray(grid_size)) == [400, 352]

    print("KERNEL_OK")
</pallas_src>

<mosaic_0001>
module attributes {stable_mosaic.version = 11 : i64} {
  func.func @_pillar_sum_kernel(%arg0: i32, %arg1: i32, %arg2: memref<1024x1xi32, #tpu.memory_space<vmem>>, %arg3: memref<1024x8xf32, #tpu.memory_space<vmem>>, %arg4: memref<8x512xf32, #tpu.memory_space<vmem>>) attributes {dimension_semantics = [#tpu.dimension_semantics<parallel>, #tpu.dimension_semantics<arbitrary>], iteration_bounds = array<i64: 1, 1>, scalar_prefetch = 0 : i64, scratch_operands = 0 : i64, tpu.core_type = #tpu.core_type<tc>, window_params = [{transform_indices = @transform_0, window_bounds = array<i64: 1024, 1>}, {transform_indices = @transform_1, window_bounds = array<i64: 1024, 8>}, {transform_indices = @transform_2, window_bounds = array<i64: 8, 512>}]} {
    %c0_i32 = arith.constant 0 : i32
    %0 = arith.cmpi eq, %arg1, %c0_i32 : i32
    %1 = arith.extui %0 : i1 to i32
    %c0_i32_0 = arith.constant 0 : i32
    %2 = arith.cmpi ne, %1, %c0_i32_0 : i32
    scf.if %2 {
      %cst_8 = arith.constant 0.000000e+00 : f32
      %18 = vector.broadcast %cst_8 : f32 to vector<8x512xf32>
      %c0_9 = arith.constant 0 : index
      %c0_10 = arith.constant 0 : index
      %19 = vector.load %arg4[%c0_9, %c0_10] : memref<8x512xf32, #tpu.memory_space<vmem>>, vector<8x512xf32>
      tpu.vector_store %arg4[%c0_9, %c0_10], %18 {strides = array<i32>} : memref<8x512xf32, #tpu.memory_space<vmem>>, vector<8x512xf32>,
    } else {
    }
    %c0 = arith.constant 0 : index
    %c0_1 = arith.constant 0 : index
    %3 = vector.load %arg2[%c0, %c0_1] : memref<1024x1xi32, #tpu.memory_space<vmem>>, vector<1024x1xi32>
    %c512_i32 = arith.constant 512 : i32
    %4 = arith.muli %arg0, %c512_i32 : i32
    %5 = tpu.iota {dimensions = array<i32: 1>} : vector<1x512xi32>
    %6 = vector.broadcast %4 : i32 to vector<1x512xi32>
    %7 = arith.addi %6, %5 : vector<1x512xi32>
    %8 = vector.broadcast %3 : vector<1024x1xi32> to vector<1024x512xi32>
    %9 = vector.broadcast %7 : vector<1x512xi32> to vector<1024x512xi32>
    %10 = arith.cmpi eq, %8, %9 : vector<1024x512xi32>
    %11 = arith.extui %10 : vector<1024x512xi1> to vector<1024x512xi32>
    %12 = arith.sitofp %11 : vector<1024x512xi32> to vector<1024x512xf32>
    %c0_2 = arith.constant 0 : index
    %c0_3 = arith.constant 0 : index
    %13 = vector.load %arg4[%c0_2, %c0_3] : memref<8x512xf32, #tpu.memory_space<vmem>>, vector<8x512xf32>
    %c0_4 = arith.constant 0 : index
    %c0_5 = arith.constant 0 : index
    %14 = vector.load %arg3[%c0_4, %c0_5] : memref<1024x8xf32, #tpu.memory_space<vmem>>, vector<1024x8xf32>
    %cst = arith.constant dense<0.000000e+00> : vector<8x512xf32>
    %15 = tpu.matmul %14, %12, %cst {dimension_numbers = #tpu.dot_dimension_numbers<[0], [0], [1], [1], [0, 1, 1, 1], [], []>} : vector<1024x8xf32>, vector<1024x512xf32>, vector<8x512xf32> -> vector<8x512xf32>
    %16 = arith.addf %13, %15 : vector<8x512xf32>
    %c0_6 = arith.constant 0 : index
    %c0_7 = arith.constant 0 : index
    %17 = vector.load %arg4[%c0_6, %c0_7] : memref<8x512xf32, #tpu.memory_space<vmem>>, vector<8x512xf32>
    tpu.vector_store %arg4[%c0_6, %c0_7], %16 {strides = array<i32>} : memref<8x512xf32, #tpu.memory_space<vmem>>, vector<8x512xf32>,
    return
  }
  func.func @transform_0(%arg0: i32, %arg1: i32) -> (i32, i32) {
    %c0_i32 = arith.constant 0 : i32
    %c0_i32_0 = arith.constant 0 : i32
    return %arg1, %c0_i32 : i32, i32
  }
  func.func @transform_1(%arg0: i32, %arg1: i32) -> (i32, i32) {
    %c0_i32 = arith.constant 0 : i32
    %c0_i32_0 = arith.constant 0 : i32
    return %arg1, %c0_i32 : i32, i32
  }
  func.func @transform_2(%arg0: i32, %arg1: i32) -> (i32, i32) {
    %c0_i32 = arith.constant 0 : i32
    %c0_i32_0 = arith.constant 0 : i32
    return %c0_i32, %arg0 : i32, i32
  }
}

</mosaic_0001>

<bundles_post_ra>
// kernel: tpu_custom_call.1
= control target key start
LH: loop header
LB: loop body
LE: loop exit
PB: predicated region body
PF: predicated region fallthrough
CT: control target
= control target key end

     0   :  { %v4783_v3 = vmov 0   ;;  %s7260_s0 = inlined_call_operand.vmem [shape: s32[1024,1], index: 0, kind: input, shape index: {}]   ;;  %s7261_s1 = inlined_call_operand.vmem [shape: f32[1024,8], index: 1, kind: input, shape index: {}]   ;;  %s7262_s2 = inlined_call_operand.hbm [shape: f32[8,512], index: 2, kind: output, shape index: {}]  }
   0x1   :  { %v20_v0 = vld [vmem:[%s7260_s0] sm:$0xff]  ;;  %4609 = vset.pattern.permute.xlu0 %v4783_v3  ;;  %v2084_v5 = vld [vmem:[%s7261_s1 + $0x8] sm:$0xff]  ;;  %v2085_v9 = vld [vmem:[%s7261_s1 + $0x10] sm:$0xff] }
   0x2   :  { %v2083_v1 = vld [vmem:[%s7261_s1] sm:$0xff]  ;;  %v2100_v6 = vld [vmem:[%s7261_s1 + $0x88] sm:$0xff]  ;;  %160 = vperm.xlu0 %4609, %v20_v0   ;;  %v2101_v10 = vld [vmem:[%s7261_s1 + $0x90] sm:$0xff] }
   0x3   :  { %v2099_v2 = vld [vmem:[%s7261_s1 + $0x80] sm:$0xff]  ;;  %v21_v7 = vld [vmem:[%s7260_s0 + $0x8] sm:$0xff]  ;;  %v4612_v8 = vpack.i.bf16 %v2084_v5, %v2100_v6  ;;  %v4614_v12 = vpack.i.bf16 %v2085_v9, %v2101_v10  ;;  %v2086_v13 = vld [vmem:[%s7261_s1 + $0x18] sm:$0xff] }
   0x4   :  { %v4610_v4 = vpack.i.bf16 %v2083_v1, %v2099_v2  ;;  %v24_v11 = vld [vmem:[%s7260_s0 + $0x20] sm:$0xff]  ;;  %v2102_v14 = vld [vmem:[%s7261_s1 + $0x98] sm:$0xff]  ;;  %v26_v15 = vld [vmem:[%s7260_s0 + $0x30] sm:$0xff] }
   0x5   :  { %v4616_v16 = vpack.i.bf16 %v2086_v13, %v2102_v14  ;;  %v2087_v17 = vld [vmem:[%s7261_s1 + $0x20] sm:$0xff]  ;;  %v2088_v21 = vld [vmem:[%s7261_s1 + $0x28] sm:$0xff]  ;;  %v30_v23 = vld [vmem:[%s7260_s0 + $0x50] sm:$0xff] }
   0x6   :  { %4611 = vxpose.xlu1.b32.start [1/16] (narrow) %v4610_v4, 8  ;;  %163 = vperm.xlu0 %4609, %v21_v7   ;;  %v2103_v18 = vld [vmem:[%s7261_s1 + $0xa0] sm:$0xff]  ;;  %v2104_v22 = vld [vmem:[%s7261_s1 + $0xa8] sm:$0xff]  ;;  %v2089_v25 = vld [vmem:[%s7261_s1 + $0x30] sm:$0xff] }
   0x7   :  { %v28_v19 = vld [vmem:[%s7260_s0 + $0x40] sm:$0xff]  ;;  %v4618_v20 = vpack.i.bf16 %v2087_v17, %v2103_v18  ;;  %v4620_v24 = vpack.i.bf16 %v2088_v21, %v2104_v22  ;;  %v2105_v26 = vld [vmem:[%s7261_s1 + $0xb0] sm:$0xff]  ;;  %v2090_v29 = vld [vmem:[%s7261_s1 + $0x38] sm:$0xff] }
   0x8   :  { %v32_v27 = vld [vmem:[%s7260_s0 + $0x60] sm:$0xff]  ;;  %v4622_v28 = vpack.i.bf16 %v2089_v25, %v2105_v26  ;;  %v2106_v30 = vld [vmem:[%s7261_s1 + $0xb8] sm:$0xff]  ;;  %v34_v31 = vld [vmem:[%s7260_s0 + $0x70] sm:$0xff] }
   0x9   :  { %v4624_v32 = vpack.i.bf16 %v2090_v29, %v2106_v30  ;;  %v2091_v33 = vld [vmem:[%s7261_s1 + $0x40] sm:$0xff] }
   0xa   :  { %4613 = vxpose.xlu1.b32.cont [2/16] (narrow) %v4612_v8, 8  ;;  %172 = vperm.xlu0 %4609, %v24_v11   ;;  %v2107_v34 = vld [vmem:[%s7261_s1 + $0xc0] sm:$0xff] }
   0xe   :  { %4615 = vxpose.xlu1.b32.cont [3/16] (narrow) %v4614_v12, 8  ;;  %178 = vperm.xlu0 %4609, %v26_v15  }
  0x12   :  { %4617 = vxpose.xlu1.b32.cont [4/16] (narrow) %v4616_v16, 8  ;;  %184 = vperm.xlu0 %4609, %v28_v19  }
  0x16   :  { %4619 = vxpose.xlu1.b32.cont [5/16] (narrow) %v4618_v20, 8  ;;  %190 = vperm.xlu0 %4609, %v30_v23  }
  0x1a   :  { %4621 = vxpose.xlu1.b32.cont [6/16] (narrow) %v4620_v24, 8  ;;  %196 = vperm.xlu0 %4609, %v32_v27  }
  0x1e   :  { %4623 = vxpose.xlu1.b32.cont [7/16] (narrow) %v4622_v28, 8 }
  0x1f   :  { %7 = vsyncpa [#allocation3], 0  ;;  %202 = vperm.xlu0 %4609, %v34_v31   ;;  %v36_v35 = vld [vmem:[%s7260_s0 + $0x80] sm:$0xff]  ;;  %v4626_v36 = vpack.i.bf16 %v2091_v33, %v2107_v34  ;;  %v2092_v37 = vld [vmem:[%s7261_s1 + $0x48] sm:$0xff]  ;;  %v149_v24 = vlaneseq }
  0x20   :  { %v2108_v38 = vld [vmem:[%s7261_s1 + $0xc8] sm:$0xff]  ;;  %v38_v39 = vld [vmem:[%s7260_s0 + $0x90] sm:$0xff]  ;;  %v40_v43 = vld [vmem:[%s7260_s0 + $0xa0] sm:$0xff] }
  0x21   :  { %v4628_v40 = vpack.i.bf16 %v2092_v37, %v2108_v38  ;;  %v2093_v41 = vld [vmem:[%s7261_s1 + $0x50] sm:$0xff]  ;;  %v2094_v45 = vld [vmem:[%s7261_s1 + $0x58] sm:$0xff]  ;;  %v2095_v49 = vld [vmem:[%s7261_s1 + $0x60] sm:$0xff]  ;;  %v5022_v27 = vand.u32 127, %v149_v24 }
  0x22   :  { %4625 = vxpose.xlu1.b32.cont [8/16] (narrow) %v4624_v32, 8  ;;  %v2109_v42 = vld [vmem:[%s7261_s1 + $0xd0] sm:$0xff]  ;;  %v2110_v46 = vld [vmem:[%s7261_s1 + $0xd8] sm:$0xff]  ;;  %v2111_v50 = vld [vmem:[%s7261_s1 + $0xe0] sm:$0xff] }
  0x23   :  { %208 = vperm.xlu0 %4609, %v36_v35   ;;  %v4630_v44 = vpack.i.bf16 %v2093_v41, %v2109_v42  ;;  %v42_v47 = vld [vmem:[%s7260_s0 + $0xb0] sm:$0xff]  ;;  %v4632_v48 = vpack.i.bf16 %v2094_v45, %v2110_v46  ;;  %v44_v51 = vld [vmem:[%s7260_s0 + $0xc0] sm:$0xff]  ;;  %v4634_v52 = vpack.i.bf16 %v2095_v49, %v2111_v50  ;;  %v2096_v53 = vld [vmem:[%s7261_s1 + $0x68] sm:$0xff]  ;;  %v5031_v30 = vadd.s32 128, %v5022_v27 }
  0x24   :  { %v2112_v54 = vld [vmem:[%s7261_s1 + $0xe8] sm:$0xff]  ;;  %v46_v55 = vld [vmem:[%s7260_s0 + $0xd0] sm:$0xff]  ;;  %v48_v59 = vld [vmem:[%s7260_s0 + $0xe0] sm:$0xff]  ;;  %v5034_v32 = vadd.s32 384, %v5022_v27  ;;  %v5043_v35 = vadd.s32 256, %v5022_v27 }
  0x25   :  { %v4636_v56 = vpack.i.bf16 %v2096_v53, %v2112_v54  ;;  %v2097_v57 = vld [vmem:[%s7261_s1 + $0x70] sm:$0xff]  ;;  %v2098_v61 = vld [vmem:[%s7261_s1 + $0x78] sm:$0xff]  ;;  %v52_v1 = vld [vmem:[%s7260_s0 + $0x100] sm:$0xff]  ;;  %v4784_v41 = vmov 1.0|1.0  }
  0x26   :  { %4627 = vxpose.xlu1.b32.cont [9/16] (narrow) %v4626_v36, 8  ;;  %v2113_v58 = vld [vmem:[%s7261_s1 + $0xf0] sm:$0xff]  ;;  %v2114_v62 = vld [vmem:[%s7261_s1 + $0xf8] sm:$0xff]  ;;  %v56_v4 = vld [vmem:[%s7260_s0 + $0x120] sm:$0xff] }
  0x27   :  { %214 = vperm.xlu0 %4609, %v38_v39   ;;  %v4638_v60 = vpack.i.bf16 %v2097_v57, %v2113_v58  ;;  %v50_v63 = vld [vmem:[%s7260_s0 + $0xf0] sm:$0xff]  ;;  %v4640_v0 = vpack.i.bf16 %v2098_v61, %v2114_v62  ;;  %v60_v6 = vld [vmem:[%s7260_s0 + $0x140] sm:$0xff]  ;;  %v23_v11 = vld [vmem:[%s7260_s0 + $0x18] sm:$0xff] }
  0x28   :  { %v54_v2 = vld [vmem:[%s7260_s0 + $0x110] sm:$0xff]  ;;  %v64_v8 = vld [vmem:[%s7260_s0 + $0x160] sm:$0xff]  ;;  %v25_v13 = vld [vmem:[%s7260_s0 + $0x28] sm:$0xff] }
  0x29   :  { %v58_v5 = vld [vmem:[%s7260_s0 + $0x130] sm:$0xff]  ;;  %v68_v12 = vld [vmem:[%s7260_s0 + $0x180] sm:$0xff]  ;;  %v27_v14 = vld [vmem:[%s7260_s0 + $0x38] sm:$0xff] }
  0x2a   :  { %4629 = vxpose.xlu1.b32.cont [10/16] (narrow) %v4628_v40, 8  ;;  %v62_v7 = vld [vmem:[%s7260_s0 + $0x150] sm:$0xff]  ;;  %v72_v15 = vld [vmem:[%s7260_s0 + $0x1a0] sm:$0xff]  ;;  %v29_v16 = vld [vmem:[%s7260_s0 + $0x48] sm:$0xff] }
  0x2b   :  { %220 = vperm.xlu0 %4609, %v40_v43   ;;  %v22_v9 = vld [vmem:[%s7260_s0 + $0x10] sm:$0xff]  ;;  %v31_v18 = vld [vmem:[%s7260_s0 + $0x58] sm:$0xff]  ;;  %v76_v19 = vld [vmem:[%s7260_s0 + $0x1c0] sm:$0xff] }
  0x2c   :  { %v66_v10 = vld [vmem:[%s7260_s0 + $0x170] sm:$0xff]  ;;  %v33_v20 = vld [vmem:[%s7260_s0 + $0x68] sm:$0xff]  ;;  %v35_v22 = vld [vmem:[%s7260_s0 + $0x78] sm:$0xff] }
  0x2d   :  { %v74_v17 = vld [vmem:[%s7260_s0 + $0x1b0] sm:$0xff]  ;;  %v80_v23 = vld [vmem:[%s7260_s0 + $0x1e0] sm:$0xff]  ;;  %v37_v25 = vld [vmem:[%s7260_s0 + $0x88] sm:$0xff] }
  0x2e   :  { %4631 = vxpose.xlu1.b32.cont [11/16] (narrow) %v4630_v44, 8  ;;  %v78_v21 = vld [vmem:[%s7260_s0 + $0x1d0] sm:$0xff]  ;;  %v39_v28 = vld [vmem:[%s7260_s0 + $0x98] sm:$0xff]  ;;  %v84_v29 = vld [vmem:[%s7260_s0 + $0x200] sm:$0xff] }
  0x2f   :  { %226 = vperm.xlu0 %4609, %v42_v47   ;;  %v82_v26 = vld [vmem:[%s7260_s0 + $0x1f0] sm:$0xff]  ;;  %v41_v33 = vld [vmem:[%s7260_s0 + $0xa8] sm:$0xff]  ;;  %v43_v39 = vld [vmem:[%s7260_s0 + $0xb8] sm:$0xff] }
  0x30   :  { %v86_v34 = vld [vmem:[%s7260_s0 + $0x210] sm:$0xff]  ;;  %v88_v40 = vld [vmem:[%s7260_s0 + $0x220] sm:$0xff]  ;;  %v45_v43 = vld [vmem:[%s7260_s0 + $0xc8] sm:$0xff] }
  0x31   :  { %v90_v44 = vld [vmem:[%s7260_s0 + $0x230] sm:$0xff]  ;;  %v47_v46 = vld [vmem:[%s7260_s0 + $0xd8] sm:$0xff]  ;;  %v92_v47 = vld [vmem:[%s7260_s0 + $0x240] sm:$0xff] }
  0x32   :  { %4633 = vxpose.xlu1.b32.cont [12/16] (narrow) %v4632_v48, 8  ;;  %v49_v49 = vld [vmem:[%s7260_s0 + $0xe8] sm:$0xff]  ;;  %v94_v50 = vld [vmem:[%s7260_s0 + $0x250] sm:$0xff]  ;;  %v96_v53 = vld [vmem:[%s7260_s0 + $0x260] sm:$0xff] }
  0x33   :  { %232 = vperm.xlu0 %4609, %v44_v51   ;;  %v55_v58 = vld [vmem:[%s7260_s0 + $0x118] sm:$0xff]  ;;  %v57_v61 = vld [vmem:[%s7260_s0 + $0x128] sm:$0xff]  ;;  %v102_v62 = vld [vmem:[%s7260_s0 + $0x290] sm:$0xff] }
  0x34   :  { %v75_v24 = vld [vmem:[%s7260_s0 + $0x1b8] sm:$0xff] }
  0x36   :  { %4635 = vxpose.xlu1.b32.cont [13/16] (narrow) %v4634_v52, 8  ;;  %v51_v52 = vld [vmem:[%s7260_s0 + $0xf8] sm:$0xff] }
  0x37   :  { %238 = vperm.xlu0 %4609, %v46_v55   ;;  %v53_v55 = vld [vmem:[%s7260_s0 + $0x108] sm:$0xff] }
  0x3a   :  { %4637 = vxpose.xlu1.b32.cont [14/16] (narrow) %v4636_v56, 8  ;;  %v98_v56 = vld [vmem:[%s7260_s0 + $0x270] sm:$0xff] }
  0x3b   :  { %244 = vperm.xlu0 %4609, %v48_v59   ;;  %v100_v59 = vld [vmem:[%s7260_s0 + $0x280] sm:$0xff] }
  0x3e   :  { %4639 = vxpose.xlu1.b32.cont [15/16] (narrow) %v4638_v60, 8 }
  0x3f   :  { %250 = vperm.xlu0 %4609, %v50_v63  }
  0x42   :  { %4641 = vxpose.xlu1.b32.end [16/16] (narrow) %v4640_v0, 8  ;;  %v59_v0 = vld [vmem:[%s7260_s0 + $0x138] sm:$0xff] }
  0x43   :  { %256 = vperm.xlu0 %4609, %v52_v1   ;;  %v104_v1 = vld [vmem:[%s7260_s0 + $0x2a0] sm:$0xff] }
  0x47   :  { %262 = vperm.xlu0 %4609, %v54_v2  }
  0x4b   :  { %268 = vperm.xlu0 %4609, %v56_v4   ;;  %v61_v4 = vld [vmem:[%s7260_s0 + $0x148] sm:$0xff] }
  0x4f   :  { %274 = vperm.xlu0 %4609, %v58_v5   ;;  %v105_v5 = vld [vmem:[%s7260_s0 + $0x2a8] sm:$0xff] }
  0x53   :  { %280 = vperm.xlu0 %4609, %v60_v6  }
  0x57   :  { %286 = vperm.xlu0 %4609, %v62_v7   ;;  %v63_v7 = vld [vmem:[%s7260_s0 + $0x158] sm:$0xff] }
  0x5b   :  { %292 = vperm.xlu0 %4609, %v64_v8   ;;  %v108_v8 = vld [vmem:[%s7260_s0 + $0x2c0] sm:$0xff] }
  0x5f   :  { %298 = vperm.xlu0 %4609, %v66_v10   ;;  %v65_v10 = vld [vmem:[%s7260_s0 + $0x168] sm:$0xff] }
  0x60   :  { %4647 = vset.pattern.permute.xlu1 %v4783_v3  ;;  %v70_v3 = vld [vmem:[%s7260_s0 + $0x190] sm:$0xff] }
  0x61   :  { %166 = vperm.xlu1 %4647, %v22_v9  }
  0x63   :  { %304 = vperm.xlu0 %4609, %v68_v12  }
  0x65   :  { %169 = vperm.xlu1 %4647, %v23_v11   ;;  %v110_v11 = vld [vmem:[%s7260_s0 + $0x2d0] sm:$0xff] }
  0x67   :  { %310 = vperm.xlu0 %4609, %v70_v3   ;;  %v112_v3 = vld [vmem:[%s7260_s0 + $0x2e0] sm:$0xff] }
  0x69   :  { %175 = vperm.xlu1 %4647, %v25_v13   ;;  %v67_v13 = vld [vmem:[%s7260_s0 + $0x178] sm:$0xff] }
  0x6b   :  { %316 = vperm.xlu0 %4609, %v72_v15   ;;  %v69_v15 = vld [vmem:[%s7260_s0 + $0x188] sm:$0xff] }
  0x6d   :  { %181 = vperm.xlu1 %4647, %v27_v14  }
  0x6f   :  { %322 = vperm.xlu0 %4609, %v74_v17  }
  0x71   :  { %187 = vperm.xlu1 %4647, %v29_v16   ;;  %v114_v16 = vld [vmem:[%s7260_s0 + $0x2f0] sm:$0xff] }
  0x73   :  { %328 = vperm.xlu0 %4609, %v76_v19   ;;  %v116_v19 = vld [vmem:[%s7260_s0 + $0x300] sm:$0xff] }
  0x75   :  { %193 = vperm.xlu1 %4647, %v31_v18   ;;  %v71_v18 = vld [vmem:[%s7260_s0 + $0x198] sm:$0xff] }
  0x77   :  { %334 = vperm.xlu0 %4609, %v78_v21   ;;  %v73_v21 = vld [vmem:[%s7260_s0 + $0x1a8] sm:$0xff] }
  0x79   :  { %199 = vperm.xlu1 %4647, %v33_v20  }
  0x7b   :  { %340 = vperm.xlu0 %4609, %v80_v23  }
  0x7d   :  { %205 = vperm.xlu1 %4647, %v35_v22   ;;  %v118_v22 = vld [vmem:[%s7260_s0 + $0x310] sm:$0xff] }
  0x7f   :  { %346 = vperm.xlu0 %4609, %v82_v26  }
  0x81   :  { %211 = vperm.xlu1 %4647, %v37_v25   ;;  %v161_v31 = vpop.permute.xlu0 %160  ;;  %v120_v25 = vld [vmem:[%s7260_s0 + $0x320] sm:$0xff] }
  0x82   :  { %vm544_vm0 = vcmp.eq.s32.totalorder %v161_v31, %v5031_v30  ;;  %vm546_vm1 = vcmp.eq.s32.totalorder %v161_v31, %v5034_v32  ;;  %vm543_vm2 = vcmp.eq.s32.totalorder %v161_v31, %v5022_v27  ;;  %vm545_vm7 = vcmp.eq.s32.totalorder %v161_v31, %v5043_v35 }
  0x83   :  { %352 = vperm.xlu0 %4609, %v84_v29   ;;  %v122_v29 = vld [vmem:[%s7260_s0 + $0x330] sm:$0xff] }
  0x85   :  { %217 = vperm.xlu1 %4647, %v39_v28   ;;  %v164_v38 = vpop.permute.xlu0 %163  ;;  %v77_v28 = vld [vmem:[%s7260_s0 + $0x1c8] sm:$0xff] }
  0x86   :  { %v5045_v36 = vpop.trf.xlu1  ;;  %vm548_vm3 = vcmp.eq.s32.totalorder %v164_v38, %v5031_v30  ;;  %vm550_vm4 = vcmp.eq.s32.totalorder %v164_v38, %v5034_v32  ;;  %vm547_vm5 = vcmp.eq.s32.totalorder %v164_v38, %v5022_v27  ;;  %vm549_vm8 = vcmp.eq.s32.totalorder %v164_v38, %v5043_v35  ;;  %v81_v38 = vld [vmem:[%s7260_s0 + $0x1e8] sm:$0xff] }
  0x87   :  { %v4643_v37 = vunpack.i.l.bf16 %v5045_v36  ;;  %358 = vperm.xlu0 %4609, %v86_v34   ;;  %vm4081_vm6 = vmpackc.low %vm548_vm3, %vm544_vm0  ;;  %v124_v34 = vld [vmem:[%s7260_s0 + $0x340] sm:$0xff] }
  0x88   :  { %4082 = vmatprep.subr.msk.bf16.mxu0 %vm4081_vm6, %v4784_v41  ;;  %vm4337_vm9 = vmpackc.low %vm550_vm4, %vm546_vm1 }
  0x89   :  { %223 = vperm.xlu1 %4647, %v41_v33   ;;  %2531 = vmatprep.mubr.f32.mxu0 %v4643_v37  ;;  %v5065_v42 = vpop.permute.xlu0 %172  ;;  %vm4083_vm10 = vmpackc.low %vm547_vm5, %vm543_vm2  ;;  %v79_v33 = vld [vmem:[%s7260_s0 + $0x1d8] sm:$0xff] }
  0x8a   :  { %2815 = vmatprep.mubr.f32.mxu1 %v4643_v37  ;;  %4338 = vmatprep.subr.msk.bf16.mxu1 %vm4337_vm9, %v4784_v41  ;;  %vm4339_vm11 = vmpackc.low %vm549_vm8, %vm545_vm7  ;;  %vm560_vm8 = vcmp.eq.s32.totalorder %v5065_v42, %v5031_v30 }
  0x8b   :  { %364 = vperm.xlu0 %4609, %v88_v40   ;;  %4084 = vmatpush1.bf16.msk.msra.mxu0 %vm4083_vm10, %v4784_v41 }
  0x8c   :  { %4340 = vmatpush1.bf16.msk.msra.mxu1 %vm4339_vm11, %v4784_v41  ;;  %vm562_vm11 = vcmp.eq.s32.totalorder %v5065_v42, %v5034_v32 }
  0x8d   :  { %229 = vperm.xlu1 %4647, %v43_v39   ;;  %v5078_v45 = vpop.permute.xlu0 %178  ;;  %v126_v39 = vld [vmem:[%s7260_s0 + $0x350] sm:$0xff] }
  0x8f   :  { %370 = vperm.xlu0 %4609, %v90_v44   ;;  %v128_v44 = vld [vmem:[%s7260_s0 + $0x360] sm:$0xff] }
  0x91   :  { %235 = vperm.xlu1 %4647, %v45_v43   ;;  %v5086_v48 = vpop.permute.xlu0 %184  ;;  %v83_v43 = vld [vmem:[%s7260_s0 + $0x1f8] sm:$0xff] }
  0x93   :  { %376 = vperm.xlu0 %4609, %v92_v47   ;;  %v85_v47 = vld [vmem:[%s7260_s0 + $0x208] sm:$0xff] }
  0x95   :  { %241 = vperm.xlu1 %4647, %v47_v46   ;;  %v5094_v51 = vpop.permute.xlu0 %190 }
  0x97   :  { %382 = vperm.xlu0 %4609, %v94_v50  }
  0x99   :  { %247 = vperm.xlu1 %4647, %v49_v49   ;;  %v5102_v54 = vpop.permute.xlu0 %196  ;;  %v130_v49 = vld [vmem:[%s7260_s0 + $0x370] sm:$0xff] }
  0x9b   :  { %388 = vperm.xlu0 %4609, %v96_v53   ;;  %v87_v53 = vld [vmem:[%s7260_s0 + $0x218] sm:$0xff] }
  0x9d   :  { %253 = vperm.xlu1 %4647, %v51_v52  }
  0x9e   :  { %v5110_v57 = vpop.permute.xlu0 %202 }
  0x9f   :  { %394 = vperm.xlu0 %4609, %v98_v56  }
  0xa1   :  { %259 = vperm.xlu1 %4647, %v53_v55   ;;  %v132_v55 = vld [vmem:[%s7260_s0 + $0x380] sm:$0xff] }
  0xa2   :  { %v5118_v60 = vpop.permute.xlu0 %208 }
  0xa3   :  { %400 = vperm.xlu0 %4609, %v100_v59   ;;  %v89_v59 = vld [vmem:[%s7260_s0 + $0x228] sm:$0xff] }
  0xa5   :  { %265 = vperm.xlu1 %4647, %v55_v58  }
  0xa6   :  { %v5126_v63 = vpop.permute.xlu0 %214 }
  0xa7   :  { %406 = vperm.xlu0 %4609, %v102_v62  }
  0xa9   :  { %271 = vperm.xlu1 %4647, %v57_v61  }
  0xaa   :  { %v5134_v2 = vpop.permute.xlu0 %220 }
  0xab   :  { %412 = vperm.xlu0 %4609, %v104_v1  }
  0xad   :  { %277 = vperm.xlu1 %4647, %v59_v0   ;;  %v91_v0 = vld [vmem:[%s7260_s0 + $0x238] sm:$0xff] }
  0xae   :  { %v5142_v6 = vpop.permute.xlu0 %226 }
  0xaf   :  { %415 = vperm.xlu0 %4609, %v105_v5  }
  0xb1   :  { %283 = vperm.xlu1 %4647, %v61_v4  }
  0xb2   :  { %v5150_v9 = vpop.permute.xlu0 %232 }
  0xb3   :  { %424 = vperm.xlu0 %4609, %v108_v8  }
  0xb5   :  { %289 = vperm.xlu1 %4647, %v63_v7  }
  0xb6   :  { %v5158_v12 = vpop.permute.xlu0 %238 }
  0xb7   :  { %430 = vperm.xlu0 %4609, %v110_v11  }
  0xb9   :  { %295 = vperm.xlu1 %4647, %v65_v10  }
  0xba   :  { %v5166_v14 = vpop.permute.xlu0 %244 }
  0xbb   :  { %436 = vperm.xlu0 %4609, %v112_v3  }
  0xbd   :  { %301 = vperm.xlu1 %4647, %v67_v13  }
  0xbe   :  { %v5174_v17 = vpop.permute.xlu0 %250 }
  0xbf   :  { %442 = vperm.xlu0 %4609, %v114_v16   ;;  %v2115_v16 = vld [vmem:[%s7261_s1 + $0x100] sm:$0xff] }
  0xc1   :  { %307 = vperm.xlu1 %4647, %v69_v15  }
  0xc2   :  { %v5182_v20 = vpop.permute.xlu0 %256 }
  0xc3   :  { %448 = vperm.xlu0 %4609, %v116_v19  }
  0xc5   :  { %313 = vperm.xlu1 %4647, %v71_v18   ;;  %v2131_v18 = vld [vmem:[%s7261_s1 + $0x180] sm:$0xff] }
  0xc6   :  { %v5190_v23 = vpop.permute.xlu0 %262  ;;  %v4648_v19 = vpack.i.bf16 %v2115_v16, %v2131_v18 }
  0xc7   :  { %454 = vperm.xlu0 %4609, %v118_v22  }
  0xc9   :  { %319 = vperm.xlu1 %4647, %v73_v21  }
  0xca   :  { %v5198_v26 = vpop.permute.xlu0 %268 }
  0xcb   :  { %460 = vperm.xlu0 %4609, %v120_v25   ;;  %v2132_v25 = vld [vmem:[%s7261_s1 + $0x188] sm:$0xff] }
  0xcd   :  { %325 = vperm.xlu1 %4647, %v75_v24   ;;  %v2116_v24 = vld [vmem:[%s7261_s1 + $0x108] sm:$0xff] }
  0xce   :  { %v5206_v31 = vpop.permute.xlu0 %274 }
  0xcf   :  { %466 = vperm.xlu0 %4609, %v122_v29  }
  0xd1   :  { %331 = vperm.xlu1 %4647, %v77_v28   ;;  %v4650_v28 = vpack.i.bf16 %v2116_v24, %v2132_v25 }
  0xd2   :  { %v5214_v37 = vpop.permute.xlu0 %280 }
  0xd3   :  { %472 = vperm.xlu0 %4609, %v124_v34   ;;  %v2117_v34 = vld [vmem:[%s7261_s1 + $0x110] sm:$0xff] }
  0xd5   :  { %337 = vperm.xlu1 %4647, %v79_v33  }
  0xd6   :  { %v5222_v40 = vpop.permute.xlu0 %286 }
  0xd7   :  { %478 = vperm.xlu0 %4609, %v126_v39  }
  0xd9   :  { %343 = vperm.xlu1 %4647, %v81_v38   ;;  %v2133_v38 = vld [vmem:[%s7261_s1 + $0x190] sm:$0xff] }
  0xda   :  { %v5230_v46 = vpop.permute.xlu0 %292  ;;  %v4652_v39 = vpack.i.bf16 %v2117_v34, %v2133_v38 }
  0xdb   :  { %484 = vperm.xlu0 %4609, %v128_v44  }
  0xdd   :  { %349 = vperm.xlu1 %4647, %v83_v43  }
  0xde   :  { %v5238_v52 = vpop.permute.xlu0 %298 }
  0xdf   :  { %490 = vperm.xlu0 %4609, %v130_v49   ;;  %v2134_v49 = vld [vmem:[%s7261_s1 + $0x198] sm:$0xff] }
  0xe0   :  { %v167_v50 = vpop.permute.xlu1 %166 }
  0xe1   :  { %355 = vperm.xlu1 %4647, %v85_v47   ;;  %vm552_vm12 = vcmp.eq.s32.totalorder %v167_v50, %v5031_v30  ;;  %vm554_vm15 = vcmp.eq.s32.totalorder %v167_v50, %v5034_v32  ;;  %vm551_vm4 = vcmp.eq.s32.totalorder %v167_v50, %v5022_v27  ;;  %vm553_vm6 = vcmp.eq.s32.totalorder %v167_v50, %v5043_v35  ;;  %v2118_v47 = vld [vmem:[%s7261_s1 + $0x118] sm:$0xff] }
  0xe2   :  { %v5246_v58 = vpop.permute.xlu0 %304  ;;  %v4654_v50 = vpack.i.bf16 %v2118_v47, %v2134_v49 }
  0xe3   :  { %496 = vperm.xlu0 %4609, %v132_v55  }
  0xe4   :  { %v170_v56 = vpop.permute.xlu1 %169 }
  0xe5   :  { %361 = vperm.xlu1 %4647, %v87_v53   ;;  %vm556_vm13 = vcmp.eq.s32.totalorder %v170_v56, %v5031_v30  ;;  %vm558_vm0 = vcmp.eq.s32.totalorder %v170_v56, %v5034_v32  ;;  %vm555_vm1 = vcmp.eq.s32.totalorder %v170_v56, %v5022_v27  ;;  %vm557_vm2 = vcmp.eq.s32.totalorder %v170_v56, %v5043_v35  ;;  %v2119_v56 = vld [vmem:[%s7261_s1 + $0x120] sm:$0xff] }
  0xe6   :  { %vm4085_vm14 = vmpackc.low %vm556_vm13, %vm552_vm12  ;;  %v5261_v62 = vpop.permute.xlu0 %310 }
  0xe7   :  { %4086 = vmatprep.subr.msk.bf16.mxu0 %vm4085_vm14, %v4784_v41  ;;  %vm4341_vm3 = vmpackc.low %vm558_vm0, %vm554_vm15  ;;  %vm559_vm0 = vcmp.eq.s32.totalorder %v5065_v42, %v5022_v27 }
  0xe8   :  { %4342 = vmatprep.subr.msk.bf16.mxu1 %vm4341_vm3, %v4784_v41  ;;  %v176_v61 = vpop.permute.xlu1 %175  ;;  %vm4087_vm5 = vmpackc.low %vm555_vm1, %vm551_vm4  ;;  %vm568_vm4 = vcmp.eq.s32.totalorder %v5078_v45, %v5031_v30 }
  0xe9   :  { %4088 = vmatpush1.bf16.msk.msra.mxu0 %vm4087_vm5, %v4784_v41  ;;  %vm4343_vm7 = vmpackc.low %vm557_vm2, %vm553_vm6  ;;  %367 = vperm.xlu1 %4647, %v89_v59   ;;  %vm564_vm9 = vcmp.eq.s32.totalorder %v176_v61, %v5031_v30  ;;  %vm566_vm12 = vcmp.eq.s32.totalorder %v176_v61, %v5034_v32  ;;  %vm563_vm13 = vcmp.eq.s32.totalorder %v176_v61, %v5022_v27  ;;  %v2135_v59 = vld [vmem:[%s7261_s1 + $0x1a0] sm:$0xff] }
  0xea   :  { %4344 = vmatpush1.bf16.msk.msra.mxu1 %vm4343_vm7, %v4784_v41  ;;  %vm4089_vm10 = vmpackc.low %vm564_vm9, %vm560_vm8  ;;  %vm565_vm14 = vcmp.eq.s32.totalorder %v176_v61, %v5043_v35  ;;  %vm561_vm2 = vcmp.eq.s32.totalorder %v5065_v42, %v5043_v35  ;;  %v5282_v4 = vpop.permute.xlu0 %316  ;;  %vm570_vm7 = vcmp.eq.s32.totalorder %v5078_v45, %v5034_v32  ;;  %v93_v42 = vld [vmem:[%s7260_s0 + $0x248] sm:$0xff]  ;;  %v4656_v61 = vpack.i.bf16 %v2119_v56, %v2135_v59 }
  0xeb   :  { %4090 = vmatprep.subr.msk.bf16.mxu0 %vm4089_vm10, %v4784_v41  ;;  %vm4345_vm15 = vmpackc.low %vm566_vm12, %vm562_vm11  ;;  %vm567_vm12 = vcmp.eq.s32.totalorder %v5078_v45, %v5022_v27 }
  0xec   :  { %4346 = vmatprep.subr.msk.bf16.mxu1 %vm4345_vm15, %v4784_v41  ;;  %v182_v1 = vpop.permute.xlu1 %181  ;;  %vm4091_vm1 = vmpackc.low %vm563_vm13, %vm559_vm0  ;;  %vm576_vm0 = vcmp.eq.s32.totalorder %v5086_v48, %v5031_v30 }
  0xed   :  { %4092 = vmatpush1.bf16.msk.msra.mxu0 %vm4091_vm1, %v4784_v41  ;;  %vm4347_vm3 = vmpackc.low %vm565_vm14, %vm561_vm2  ;;  %373 = vperm.xlu1 %4647, %v91_v0   ;;  %vm572_vm5 = vcmp.eq.s32.totalorder %v182_v1, %v5031_v30  ;;  %vm574_vm8 = vcmp.eq.s32.totalorder %v182_v1, %v5034_v32  ;;  %vm571_vm9 = vcmp.eq.s32.totalorder %v182_v1, %v5022_v27 }
  0xee   :  { %4348 = vmatpush1.bf16.msk.msra.mxu1 %vm4347_vm3, %v4784_v41  ;;  %vm4093_vm6 = vmpackc.low %vm572_vm5, %vm568_vm4  ;;  %vm573_vm10 = vcmp.eq.s32.totalorder %v182_v1, %v5043_v35  ;;  %vm569_vm14 = vcmp.eq.s32.totalorder %v5078_v45, %v5043_v35  ;;  %v5303_v7 = vpop.permute.xlu0 %322  ;;  %vm578_vm3 = vcmp.eq.s32.totalorder %v5086_v48, %v5034_v32  ;;  %v95_v45 = vld [vmem:[%s7260_s0 + $0x258] sm:$0xff] }
  0xef   :  { %4094 = vmatprep.subr.msk.bf16.mxu0 %vm4093_vm6, %v4784_v41  ;;  %vm4349_vm11 = vmpackc.low %vm574_vm8, %vm570_vm7  ;;  %vm575_vm8 = vcmp.eq.s32.totalorder %v5086_v48, %v5022_v27 }
  0xf0   :  { %4350 = vmatprep.subr.msk.bf16.mxu1 %vm4349_vm11, %v4784_v41  ;;  %v188_v5 = vpop.permute.xlu1 %187  ;;  %vm4095_vm13 = vmpackc.low %vm571_vm9, %vm567_vm12  ;;  %vm584_vm12 = vcmp.eq.s32.totalorder %v5094_v51, %v5031_v30 }
  0xf1   :  { %4096 = vmatpush1.bf16.msk.msra.mxu0 %vm4095_vm13, %v4784_v41  ;;  %vm4351_vm15 = vmpackc.low %vm573_vm10, %vm569_vm14  ;;  %379 = vperm.xlu1 %4647, %v93_v42   ;;  %vm580_vm1 = vcmp.eq.s32.totalorder %v188_v5, %v5031_v30  ;;  %vm582_vm4 = vcmp.eq.s32.totalorder %v188_v5, %v5034_v32  ;;  %vm579_vm5 = vcmp.eq.s32.totalorder %v188_v5, %v5022_v27  ;;  %v2120_v42 = vld [vmem:[%s7261_s1 + $0x128] sm:$0xff] }
  0xf2   :  { %4352 = vmatpush1.bf16.msk.msra.mxu1 %vm4351_vm15, %v4784_v41  ;;  %vm4097_vm2 = vmpackc.low %vm580_vm1, %vm576_vm0  ;;  %vm581_vm6 = vcmp.eq.s32.totalorder %v188_v5, %v5043_v35  ;;  %vm577_vm10 = vcmp.eq.s32.totalorder %v5086_v48, %v5043_v35  ;;  %v5324_v10 = vpop.permute.xlu0 %328  ;;  %vm586_vm15 = vcmp.eq.s32.totalorder %v5094_v51, %v5034_v32  ;;  %v97_v48 = vld [vmem:[%s7260_s0 + $0x268] sm:$0xff] }
  0xf3   :  { %4098 = vmatprep.subr.msk.bf16.mxu0 %vm4097_vm2, %v4784_v41  ;;  %vm4353_vm7 = vmpackc.low %vm582_vm4, %vm578_vm3  ;;  %vm583_vm4 = vcmp.eq.s32.totalorder %v5094_v51, %v5022_v27  ;;  %v2136_v5 = vld [vmem:[%s7261_s1 + $0x1a8] sm:$0xff] }
  0xf4   :  { %4354 = vmatprep.subr.msk.bf16.mxu1 %vm4353_vm7, %v4784_v41  ;;  %v194_v8 = vpop.permute.xlu1 %193  ;;  %vm4099_vm9 = vmpackc.low %vm579_vm5, %vm575_vm8  ;;  %vm592_vm8 = vcmp.eq.s32.totalorder %v5102_v54, %v5031_v30 }
  0xf5   :  { %4100 = vmatpush1.bf16.msk.msra.mxu0 %vm4099_vm9, %v4784_v41  ;;  %vm4355_vm11 = vmpackc.low %vm581_vm6, %vm577_vm10  ;;  %385 = vperm.xlu1 %4647, %v95_v45   ;;  %vm588_vm13 = vcmp.eq.s32.totalorder %v194_v8, %v5031_v30  ;;  %vm590_vm0 = vcmp.eq.s32.totalorder %v194_v8, %v5034_v32  ;;  %vm587_vm1 = vcmp.eq.s32.totalorder %v194_v8, %v5022_v27 }
  0xf6   :  { %4356 = vmatpush1.bf16.msk.msra.mxu1 %vm4355_vm11, %v4784_v41  ;;  %vm4101_vm14 = vmpackc.low %vm588_vm13, %vm584_vm12  ;;  %vm589_vm2 = vcmp.eq.s32.totalorder %v194_v8, %v5043_v35  ;;  %vm585_vm6 = vcmp.eq.s32.totalorder %v5094_v51, %v5043_v35  ;;  %v5345_v13 = vpop.permute.xlu0 %334  ;;  %vm594_vm11 = vcmp.eq.s32.totalorder %v5102_v54, %v5034_v32  ;;  %v99_v51 = vld [vmem:[%s7260_s0 + $0x278] sm:$0xff]  ;;  %v4658_v45 = vpack.i.bf16 %v2120_v42, %v2136_v5 }
  0xf7   :  { %4102 = vmatprep.subr.msk.bf16.mxu0 %vm4101_vm14, %v4784_v41  ;;  %vm4357_vm3 = vmpackc.low %vm590_vm0, %vm586_vm15  ;;  %vm591_vm0 = vcmp.eq.s32.totalorder %v5102_v54, %v5022_v27 }
  0xf8   :  { %4358 = vmatprep.subr.msk.bf16.mxu1 %vm4357_vm3, %v4784_v41  ;;  %v200_v11 = vpop.permute.xlu1 %199  ;;  %vm4103_vm5 = vmpackc.low %vm587_vm1, %vm583_vm4  ;;  %vm600_vm4 = vcmp.eq.s32.totalorder %v5110_v57, %v5031_v30 }
  0xf9   :  { %4104 = vmatpush1.bf16.msk.msra.mxu0 %vm4103_vm5, %v4784_v41  ;;  %vm4359_vm7 = vmpackc.low %vm589_vm2, %vm585_vm6  ;;  %391 = vperm.xlu1 %4647, %v97_v48   ;;  %vm596_vm9 = vcmp.eq.s32.totalorder %v200_v11, %v5031_v30  ;;  %vm598_vm12 = vcmp.eq.s32.totalorder %v200_v11, %v5034_v32  ;;  %vm595_vm13 = vcmp.eq.s32.totalorder %v200_v11, %v5022_v27 }
  0xfa   :  { %4360 = vmatpush1.bf16.msk.msra.mxu1 %vm4359_vm7, %v4784_v41  ;;  %vm4105_vm10 = vmpackc.low %vm596_vm9, %vm592_vm8  ;;  %vm597_vm14 = vcmp.eq.s32.totalorder %v200_v11, %v5043_v35  ;;  %vm593_vm2 = vcmp.eq.s32.totalorder %v5102_v54, %v5043_v35  ;;  %v5366_v15 = vpop.permute.xlu0 %340  ;;  %vm602_vm7 = vcmp.eq.s32.totalorder %v5110_v57, %v5034_v32  ;;  %v101_v54 = vld [vmem:[%s7260_s0 + $0x288] sm:$0xff]  ;;  %v2121_v11 = vld [vmem:[%s7261_s1 + $0x130] sm:$0xff] }
  0xfb   :  { %4106 = vmatprep.subr.msk.bf16.mxu0 %vm4105_vm10, %v4784_v41  ;;  %vm4361_vm15 = vmpackc.low %vm598_vm12, %vm594_vm11  ;;  %vm599_vm12 = vcmp.eq.s32.totalorder %v5110_v57, %v5022_v27 }
  0xfc   :  { %4362 = vmatprep.subr.msk.bf16.mxu1 %vm4361_vm15, %v4784_v41  ;;  %v206_v3 = vpop.permute.xlu1 %205  ;;  %vm4107_vm1 = vmpackc.low %vm595_vm13, %vm591_vm0  ;;  %vm608_vm0 = vcmp.eq.s32.totalorder %v5118_v60, %v5031_v30 }
  0xfd   :  { %4108 = vmatpush1.bf16.msk.msra.mxu0 %vm4107_vm1, %v4784_v41  ;;  %vm4363_vm3 = vmpackc.low %vm597_vm14, %vm593_vm2  ;;  %397 = vperm.xlu1 %4647, %v99_v51   ;;  %vm604_vm5 = vcmp.eq.s32.totalorder %v206_v3, %v5031_v30  ;;  %vm606_vm8 = vcmp.eq.s32.totalorder %v206_v3, %v5034_v32  ;;  %vm603_vm9 = vcmp.eq.s32.totalorder %v206_v3, %v5022_v27  ;;  %v2137_v51 = vld [vmem:[%s7261_s1 + $0x1b0] sm:$0xff] }
  0xfe   :  { %4364 = vmatpush1.bf16.msk.msra.mxu1 %vm4363_vm3, %v4784_v41  ;;  %vm4109_vm6 = vmpackc.low %vm604_vm5, %vm600_vm4  ;;  %vm605_vm10 = vcmp.eq.s32.totalorder %v206_v3, %v5043_v35  ;;  %vm601_vm14 = vcmp.eq.s32.totalorder %v5110_v57, %v5043_v35  ;;  %v5393_v22 = vpop.permute.xlu0 %346  ;;  %vm610_vm3 = vcmp.eq.s32.totalorder %v5118_v60, %v5034_v32  ;;  %v103_v57 = vld [vmem:[%s7260_s0 + $0x298] sm:$0xff]  ;;  %v4660_v3 = vpack.i.bf16 %v2121_v11, %v2137_v51  ;;  %v2128_v51 = vld [vmem:[%s7261_s1 + $0x168] sm:$0xff] }
  0xff   :  { %4110 = vmatprep.subr.msk.bf16.mxu0 %vm4109_vm6, %v4784_v41  ;;  %vm4365_vm11 = vmpackc.low %vm606_vm8, %vm602_vm7  ;;  %vm607_vm8 = vcmp.eq.s32.totalorder %v5118_v60, %v5022_v27 }
 0x100   :  { %4366 = vmatprep.subr.msk.bf16.mxu1 %vm4365_vm11, %v4784_v41  ;;  %v212_v21 = vpop.permute.xlu1 %211  ;;  %vm4111_vm13 = vmpackc.low %vm603_vm9, %vm599_vm12  ;;  %vm616_vm12 = vcmp.eq.s32.totalorder %v5126_v63, %v5031_v30 }
 0x101   :  { %4112 = vmatpush1.bf16.msk.msra.mxu0 %vm4111_vm13, %v4784_v41  ;;  %vm4367_vm15 = vmpackc.low %vm605_vm10, %vm601_vm14  ;;  %403 = vperm.xlu1 %4647, %v101_v54   ;;  %vm612_vm1 = vcmp.eq.s32.totalorder %v212_v21, %v5031_v30  ;;  %vm614_vm4 = vcmp.eq.s32.totalorder %v212_v21, %v5034_v32  ;;  %vm611_vm5 = vcmp.eq.s32.totalorder %v212_v21, %v5022_v27  ;;  %v2122_v54 = vld [vmem:[%s7261_s1 + $0x138] sm:$0xff] }
 0x102   :  { %4368 = vmatpush1.bf16.msk.msra.mxu1 %vm4367_vm15, %v4784_v41  ;;  %vm4113_vm2 = vmpackc.low %vm612_vm1, %vm608_vm0  ;;  %vm613_vm6 = vcmp.eq.s32.totalorder %v212_v21, %v5043_v35  ;;  %4649 = vxpose.xlu0.b32.start [1/16] (narrow) %v4648_v19, 8  ;;  %vm609_vm10 = vcmp.eq.s32.totalorder %v5118_v60, %v5043_v35  ;;  %v5420_v33 = vpop.permute.xlu0 %352  ;;  %vm618_vm15 = vcmp.eq.s32.totalorder %v5126_v63, %v5034_v32  ;;  %v106_v60 = vld [vmem:[%s7260_s0 + $0x2b0] sm:$0xff]  ;;  %v2138_v19 = vld [vmem:[%s7261_s1 + $0x1b8] sm:$0xff] }
 0x103   :  { %4114 = vmatprep.subr.msk.bf16.mxu0 %vm4113_vm2, %v4784_v41  ;;  %vm4369_vm7 = vmpackc.low %vm614_vm4, %vm610_vm3  ;;  %vm615_vm4 = vcmp.eq.s32.totalorder %v5126_v63, %v5022_v27  ;;  %v4662_v21 = vpack.i.bf16 %v2122_v54, %v2138_v19  ;;  %v2129_v19 = vld [vmem:[%s7261_s1 + $0x170] sm:$0xff] }
 0x104   :  { %4370 = vmatprep.subr.msk.bf16.mxu1 %vm4369_vm7, %v4784_v41  ;;  %v218_v29 = vpop.permute.xlu1 %217  ;;  %vm4115_vm9 = vmpackc.low %vm611_vm5, %vm607_vm8  ;;  %vm624_vm8 = vcmp.eq.s32.totalorder %v5134_v2, %v5031_v30 }
 0x105   :  { %4116 = vmatpush1.bf16.msk.msra.mxu0 %vm4115_vm9, %v4784_v41  ;;  %vm4371_vm11 = vmpackc.low %vm613_vm6, %vm609_vm10  ;;  %409 = vperm.xlu1 %4647, %v103_v57   ;;  %vm620_vm13 = vcmp.eq.s32.totalorder %v218_v29, %v5031_v30  ;;  %vm622_vm0 = vcmp.eq.s32.totalorder %v218_v29, %v5034_v32  ;;  %vm619_vm1 = vcmp.eq.s32.totalorder %v218_v29, %v5022_v27  ;;  %v2123_v57 = vld [vmem:[%s7261_s1 + $0x140] sm:$0xff] }
 0x106   :  { %4372 = vmatpush1.bf16.msk.msra.mxu1 %vm4371_vm11, %v4784_v41  ;;  %vm4117_vm14 = vmpackc.low %vm620_vm13, %vm616_vm12  ;;  %vm621_vm2 = vcmp.eq.s32.totalorder %v218_v29, %v5043_v35  ;;  %4651 = vxpose.xlu0.b32.cont [2/16] (narrow) %v4650_v28, 8  ;;  %vm617_vm6 = vcmp.eq.s32.totalorder %v5126_v63, %v5043_v35  ;;  %v5449_v44 = vpop.permute.xlu0 %358  ;;  %vm626_vm11 = vcmp.eq.s32.totalorder %v5134_v2, %v5034_v32  ;;  %v107_v63 = vld [vmem:[%s7260_s0 + $0x2b8] sm:$0xff]  ;;  %v2139_v28 = vld [vmem:[%s7261_s1 + $0x1c0] sm:$0xff] }
 0x107   :  { %4118 = vmatprep.subr.msk.bf16.mxu0 %vm4117_vm14, %v4784_v41  ;;  %vm4373_vm3 = vmpackc.low %vm622_vm0, %vm618_vm15  ;;  %vm623_vm0 = vcmp.eq.s32.totalorder %v5134_v2, %v5022_v27  ;;  %v4664_v29 = vpack.i.bf16 %v2123_v57, %v2139_v28  ;;  %v2130_v28 = vld [vmem:[%s7261_s1 + $0x178] sm:$0xff] }
 0x108   :  { %4374 = vmatprep.subr.msk.bf16.mxu1 %vm4373_vm3, %v4784_v41  ;;  %v224_v43 = vpop.permute.xlu1 %223  ;;  %vm4119_vm5 = vmpackc.low %vm619_vm1, %vm615_vm4  ;;  %vm632_vm4 = vcmp.eq.s32.totalorder %v5142_v6, %v5031_v30 }
 0x109   :  { %4120 = vmatpush1.bf16.msk.msra.mxu0 %vm4119_vm5, %v4784_v41  ;;  %vm4375_vm7 = vmpackc.low %vm621_vm2, %vm617_vm6  ;;  %418 = vperm.xlu1 %4647, %v106_v60   ;;  %vm628_vm9 = vcmp.eq.s32.totalorder %v224_v43, %v5031_v30  ;;  %vm630_vm12 = vcmp.eq.s32.totalorder %v224_v43, %v5034_v32  ;;  %vm627_vm13 = vcmp.eq.s32.totalorder %v224_v43, %v5022_v27  ;;  %v2124_v60 = vld [vmem:[%s7261_s1 + $0x148] sm:$0xff] }
 0x10a   :  { %4376 = vmatpush1.bf16.msk.msra.mxu1 %vm4375_vm7, %v4784_v41  ;;  %vm4121_vm10 = vmpackc.low %vm628_vm9, %vm624_vm8  ;;  %vm629_vm14 = vcmp.eq.s32.totalorder %v224_v43, %v5043_v35  ;;  %4653 = vxpose.xlu0.b32.cont [3/16] (narrow) %v4652_v39, 8  ;;  %vm625_vm2 = vcmp.eq.s32.totalorder %v5134_v2, %v5043_v35  ;;  %v5478_v55 = vpop.permute.xlu0 %364  ;;  %vm634_vm7 = vcmp.eq.s32.totalorder %v5142_v6, %v5034_v32  ;;  %v109_v2 = vld [vmem:[%s7260_s0 + $0x2c8] sm:$0xff]  ;;  %v4646_v43 = vunpack.i.h.bf16 %v5045_v36  ;;  %v119_v36 = vld [vmem:[%s7260_s0 + $0x318] sm:$0xff] }
 0x10b   :  { %4122 = vmatprep.subr.msk.bf16.mxu0 %vm4121_vm10, %v4784_v41  ;;  %vm4377_vm15 = vmpackc.low %vm630_vm12, %vm626_vm11  ;;  %vm631_vm12 = vcmp.eq.s32.totalorder %v5142_v6, %v5022_v27  ;;  %v2140_v39 = vld [vmem:[%s7261_s1 + $0x1c8] sm:$0xff] }
 0x10c   :  { %4378 = vmatprep.subr.msk.bf16.mxu1 %vm4377_vm15, %v4784_v41  ;;  %v230_v53 = vpop.permute.xlu1 %229  ;;  %vm4123_vm1 = vmpackc.low %vm627_vm13, %vm623_vm0  ;;  %vm640_vm0 = vcmp.eq.s32.totalorder %v5150_v9, %v5031_v30 }
 0x10d   :  { %4124 = vmatpush1.bf16.msk.msra.mxu0 %vm4123_vm1, %v4784_v41  ;;  %vm4379_vm3 = vmpackc.low %vm629_vm14, %vm625_vm2  ;;  %421 = vperm.xlu1 %4647, %v107_v63   ;;  %vm636_vm5 = vcmp.eq.s32.totalorder %v230_v53, %v5031_v30  ;;  %vm638_vm8 = vcmp.eq.s32.totalorder %v230_v53, %v5034_v32  ;;  %vm635_vm9 = vcmp.eq.s32.totalorder %v230_v53, %v5022_v27  ;;  %v2125_v63 = vld [vmem:[%s7261_s1 + $0x150] sm:$0xff] }
 0x10e   :  { %4380 = vmatpush1.bf16.msk.msra.mxu1 %vm4379_vm3, %v4784_v41  ;;  %vm4125_vm6 = vmpackc.low %vm636_vm5, %vm632_vm4  ;;  %vm637_vm10 = vcmp.eq.s32.totalorder %v230_v53, %v5043_v35  ;;  %4655 = vxpose.xlu0.b32.cont [4/16] (narrow) %v4654_v50, 8  ;;  %vm633_vm14 = vcmp.eq.s32.totalorder %v5142_v6, %v5043_v35  ;;  %v5507_v1 = vpop.permute.xlu0 %370  ;;  %vm642_vm3 = vcmp.eq.s32.totalorder %v5150_v9, %v5034_v32  ;;  %v111_v6 = vld [vmem:[%s7260_s0 + $0x2d8] sm:$0xff]  ;;  %v2141_v50 = vld [vmem:[%s7261_s1 + $0x1d0] sm:$0xff] }
 0x10f   :  { %4126 = vmatprep.subr.msk.bf16.mxu0 %vm4125_vm6, %v4784_v41  ;;  %vm4381_vm11 = vmpackc.low %vm638_vm8, %vm634_vm7  ;;  %vm639_vm8 = vcmp.eq.s32.totalorder %v5150_v9, %v5022_v27  ;;  %v4668_v53 = vpack.i.bf16 %v2125_v63, %v2141_v50  ;;  %v2164_v63 = vld [vmem:[%s7261_s1 + $0x288] sm:$0xff] }
 0x110   :  { %4382 = vmatprep.subr.msk.bf16.mxu1 %vm4381_vm11, %v4784_v41  ;;  %v236_v0 = vpop.permute.xlu1 %235  ;;  %vm4127_vm13 = vmpackc.low %vm635_vm9, %vm631_vm12  ;;  %vm648_vm12 = vcmp.eq.s32.totalorder %v5158_v12, %v5031_v30 }
 0x111   :  { %4128 = vmatpush1.bf16.msk.msra.mxu0 %vm4127_vm13, %v4784_v41  ;;  %vm4383_vm15 = vmpackc.low %vm637_vm10, %vm633_vm14  ;;  %427 = vperm.xlu1 %4647, %v109_v2   ;;  %vm644_vm1 = vcmp.eq.s32.totalorder %v236_v0, %v5031_v30  ;;  %vm646_vm4 = vcmp.eq.s32.totalorder %v236_v0, %v5034_v32  ;;  %vm643_vm5 = vcmp.eq.s32.totalorder %v236_v0, %v5022_v27  ;;  %v2126_v2 = vld [vmem:[%s7261_s1 + $0x158] sm:$0xff] }
 0x112   :  { %4384 = vmatpush1.bf16.msk.msra.mxu1 %vm4383_vm15, %v4784_v41  ;;  %vm4129_vm2 = vmpackc.low %vm644_vm1, %vm640_vm0  ;;  %vm645_vm6 = vcmp.eq.s32.totalorder %v236_v0, %v5043_v35  ;;  %4657 = vxpose.xlu0.b32.cont [5/16] (narrow) %v4656_v61, 8  ;;  %vm641_vm10 = vcmp.eq.s32.totalorder %v5150_v9, %v5043_v35  ;;  %v5536_v48 = vpop.permute.xlu0 %376  ;;  %vm650_vm15 = vcmp.eq.s32.totalorder %v5158_v12, %v5034_v32  ;;  %v113_v9 = vld [vmem:[%s7260_s0 + $0x2e8] sm:$0xff]  ;;  %v2142_v61 = vld [vmem:[%s7261_s1 + $0x1d8] sm:$0xff] }
 0x113   :  { %4130 = vmatprep.subr.msk.bf16.mxu0 %vm4129_vm2, %v4784_v41  ;;  %vm4385_vm7 = vmpackc.low %vm646_vm4, %vm642_vm3  ;;  %vm647_vm4 = vcmp.eq.s32.totalorder %v5158_v12, %v5022_v27  ;;  %v4670_v0 = vpack.i.bf16 %v2126_v2, %v2142_v61  ;;  %v2149_v2 = vld [vmem:[%s7261_s1 + $0x210] sm:$0xff] }
 0x114   :  { %4386 = vmatprep.subr.msk.bf16.mxu1 %vm4385_vm7, %v4784_v41  ;;  %v242_v8 = vpop.permute.xlu1 %241  ;;  %vm4131_vm9 = vmpackc.low %vm643_vm5, %vm639_vm8  ;;  %vm656_vm8 = vcmp.eq.s32.totalorder %v5166_v14, %v5031_v30  ;;  %v2165_v61 = vld [vmem:[%s7261_s1 + $0x290] sm:$0xff] }
 0x115   :  { %4132 = vmatpush1.bf16.msk.msra.mxu0 %vm4131_vm9, %v4784_v41  ;;  %vm4387_vm11 = vmpackc.low %vm645_vm6, %vm641_vm10  ;;  %433 = vperm.xlu1 %4647, %v111_v6   ;;  %vm652_vm13 = vcmp.eq.s32.totalorder %v242_v8, %v5031_v30  ;;  %vm654_vm0 = vcmp.eq.s32.totalorder %v242_v8, %v5034_v32  ;;  %vm651_vm1 = vcmp.eq.s32.totalorder %v242_v8, %v5022_v27  ;;  %v2127_v6 = vld [vmem:[%s7261_s1 + $0x160] sm:$0xff] }
 0x116   :  { %4388 = vmatpush1.bf16.msk.msra.mxu1 %vm4387_vm11, %v4784_v41  ;;  %vm4133_vm14 = vmpackc.low %vm652_vm13, %vm648_vm12  ;;  %vm653_vm2 = vcmp.eq.s32.totalorder %v242_v8, %v5043_v35  ;;  %4659 = vxpose.xlu0.b32.cont [6/16] (narrow) %v4658_v45, 8  ;;  %vm649_vm6 = vcmp.eq.s32.totalorder %v5158_v12, %v5043_v35  ;;  %v5565_v18 = vpop.permute.xlu0 %382  ;;  %vm658_vm11 = vcmp.eq.s32.totalorder %v5166_v14, %v5034_v32  ;;  %v115_v12 = vld [vmem:[%s7260_s0 + $0x2f8] sm:$0xff]  ;;  %v2143_v45 = vld [vmem:[%s7261_s1 + $0x1e0] sm:$0xff] }
 0x117   :  { %4134 = vmatprep.subr.msk.bf16.mxu0 %vm4133_vm14, %v4784_v41  ;;  %vm4389_vm3 = vmpackc.low %vm654_vm0, %vm650_vm15  ;;  %vm655_vm0 = vcmp.eq.s32.totalorder %v5166_v14, %v5022_v27  ;;  %v4672_v8 = vpack.i.bf16 %v2127_v6, %v2143_v45  ;;  %v2150_v6 = vld [vmem:[%s7261_s1 + $0x218] sm:$0xff] }
 0x118   :  { %4390 = vmatprep.subr.msk.bf16.mxu1 %vm4389_vm3, %v4784_v41  ;;  %v248_v16 = vpop.permute.xlu1 %247  ;;  %vm4135_vm5 = vmpackc.low %vm651_vm1, %vm647_vm4  ;;  %vm664_vm4 = vcmp.eq.s32.totalorder %v5174_v17, %v5031_v30  ;;  %v2166_v45 = vld [vmem:[%s7261_s1 + $0x298] sm:$0xff] }
 0x119   :  { %4136 = vmatpush1.bf16.msk.msra.mxu0 %vm4135_vm5, %v4784_v41  ;;  %vm4391_vm7 = vmpackc.low %vm653_vm2, %vm649_vm6  ;;  %439 = vperm.xlu1 %4647, %v113_v9   ;;  %vm660_vm9 = vcmp.eq.s32.totalorder %v248_v16, %v5031_v30  ;;  %vm662_vm12 = vcmp.eq.s32.totalorder %v248_v16, %v5034_v32  ;;  %vm659_vm13 = vcmp.eq.s32.totalorder %v248_v16, %v5022_v27  ;;  %v2144_v9 = vld [vmem:[%s7261_s1 + $0x1e8] sm:$0xff] }
 0x11a   :  { %4392 = vmatpush1.bf16.msk.msra.mxu1 %vm4391_vm7, %v4784_v41  ;;  %vm4137_vm10 = vmpackc.low %vm660_vm9, %vm656_vm8  ;;  %vm661_vm14 = vcmp.eq.s32.totalorder %v248_v16, %v5043_v35  ;;  %4661 = vxpose.xlu0.b32.cont [7/16] (narrow) %v4660_v3, 8  ;;  %vm657_vm2 = vcmp.eq.s32.totalorder %v5166_v14, %v5043_v35  ;;  %v5594_v25 = vpop.permute.xlu0 %388  ;;  %vm666_vm7 = vcmp.eq.s32.totalorder %v5174_v17, %v5034_v32  ;;  %v117_v14 = vld [vmem:[%s7260_s0 + $0x308] sm:$0xff] }
 0x11b   :  { %4138 = vmatprep.subr.msk.bf16.mxu0 %vm4137_vm10, %v4784_v41  ;;  %vm4393_vm15 = vmpackc.low %vm662_vm12, %vm658_vm11  ;;  %vm663_vm12 = vcmp.eq.s32.totalorder %v5174_v17, %v5022_v27  ;;  %v4674_v16 = vpack.i.bf16 %v2128_v51, %v2144_v9  ;;  %v2151_v51 = vld [vmem:[%s7261_s1 + $0x220] sm:$0xff] }
 0x11c   :  { %4394 = vmatprep.subr.msk.bf16.mxu1 %vm4393_vm15, %v4784_v41  ;;  %v254_v24 = vpop.permute.xlu1 %253  ;;  %vm4139_vm1 = vmpackc.low %vm659_vm13, %vm655_vm0  ;;  %vm672_vm0 = vcmp.eq.s32.totalorder %v5182_v20, %v5031_v30  ;;  %v2167_v9 = vld [vmem:[%s7261_s1 + $0x2a0] sm:$0xff] }
 0x11d   :  { %4140 = vmatpush1.bf16.msk.msra.mxu0 %vm4139_vm1, %v4784_v41  ;;  %vm4395_vm3 = vmpackc.low %vm661_vm14, %vm657_vm2  ;;  %445 = vperm.xlu1 %4647, %v115_v12   ;;  %vm668_vm5 = vcmp.eq.s32.totalorder %v254_v24, %v5031_v30  ;;  %vm670_vm8 = vcmp.eq.s32.totalorder %v254_v24, %v5034_v32  ;;  %vm667_vm9 = vcmp.eq.s32.totalorder %v254_v24, %v5022_v27  ;;  %v2145_v12 = vld [vmem:[%s7261_s1 + $0x1f0] sm:$0xff] }
 0x11e   :  { %4396 = vmatpush1.bf16.msk.msra.mxu1 %vm4395_vm3, %v4784_v41  ;;  %vm4141_vm6 = vmpackc.low %vm668_vm5, %vm664_vm4  ;;  %vm669_vm10 = vcmp.eq.s32.totalorder %v254_v24, %v5043_v35  ;;  %4663 = vxpose.xlu0.b32.cont [8/16] (narrow) %v4662_v21, 8  ;;  %vm665_vm14 = vcmp.eq.s32.totalorder %v5174_v17, %v5043_v35  ;;  %v5623_v38 = vpop.permute.xlu0 %394  ;;  %vm674_vm3 = vcmp.eq.s32.totalorder %v5182_v20, %v5034_v32  ;;  %v129_v21 = vld [vmem:[%s7260_s0 + $0x368] sm:$0xff] }
 0x11f   :  { %4142 = vmatprep.subr.msk.bf16.mxu0 %vm4141_vm6, %v4784_v41  ;;  %vm4397_vm11 = vmpackc.low %vm670_vm8, %vm666_vm7  ;;  %vm671_vm7 = vcmp.eq.s32.totalorder %v5182_v20, %v5022_v27  ;;  %v4666_v17 = vpack.i.bf16 %v2124_v60, %v2140_v39  ;;  %v4676_v24 = vpack.i.bf16 %v2129_v19, %v2145_v12  ;;  %v2147_v60 = vld [vmem:[%s7261_s1 + $0x200] sm:$0xff]  ;;  %v2152_v12 = vld [vmem:[%s7261_s1 + $0x228] sm:$0xff] }
 0x120   :  { %4398 = vmatprep.subr.msk.bf16.mxu1 %vm4397_vm11, %v4784_v41  ;;  %v260_v34 = vpop.permute.xlu1 %259  ;;  %vm4143_vm13 = vmpackc.low %vm667_vm9, %vm663_vm12  ;;  %vm673_vm9 = vcmp.eq.s32.totalorder %v5182_v20, %v5043_v35  ;;  %vm680_vm12 = vcmp.eq.s32.totalorder %v5190_v23, %v5031_v30  ;;  %v121_v20 = vld [vmem:[%s7260_s0 + $0x328] sm:$0xff]  ;;  %v2163_v39 = vld [vmem:[%s7261_s1 + $0x280] sm:$0xff] }
 0x121   :  { %4144 = vmatpush1.bf16.msk.msra.mxu0 %vm4143_vm13, %v4784_v41  ;;  %vm4399_vm15 = vmpackc.low %vm669_vm10, %vm665_vm14  ;;  %451 = vperm.xlu1 %4647, %v117_v14   ;;  %vm676_vm1 = vcmp.eq.s32.totalorder %v260_v34, %v5031_v30  ;;  %vm678_vm4 = vcmp.eq.s32.totalorder %v260_v34, %v5034_v32  ;;  %vm675_vm5 = vcmp.eq.s32.totalorder %v260_v34, %v5022_v27  ;;  %v2146_v14 = vld [vmem:[%s7261_s1 + $0x1f8] sm:$0xff] }
 0x122   :  { %4400 = vmatpush1.bf16.msk.msra.mxu1 %vm4399_vm15, %v4784_v41  ;;  %vm4145_vm2 = vmpackc.low %vm676_vm1, %vm672_vm0  ;;  %vm677_vm6 = vcmp.eq.s32.totalorder %v260_v34, %v5043_v35  ;;  %4665 = vxpose.xlu0.b32.cont [9/16] (narrow) %v4664_v29, 8  ;;  %v5653_v49 = vpop.permute.xlu0 %400  ;;  %vm682_vm14 = vcmp.eq.s32.totalorder %v5190_v23, %v5034_v32  ;;  %v4678_v29 = vpack.i.bf16 %v2130_v28, %v2146_v14  ;;  %v2153_v14 = vld [vmem:[%s7261_s1 + $0x230] sm:$0xff] }
 0x123   :  { %4146 = vmatprep.subr.msk.bf16.mxu0 %vm4145_vm2, %v4784_v41  ;;  %vm4401_vm8 = vmpackc.low %vm678_vm4, %vm674_vm3  ;;  %vm679_vm3 = vcmp.eq.s32.totalorder %v5190_v23, %v5022_v27 }
 0x124   :  { %2532 = vmatmul.mubr.f32.vlgmr.msra.gmra.mrb[0].mxu0 %v4646_v43  ;;  %4402 = vmatprep.subr.msk.bf16.mxu1 %vm4401_vm8, %v4784_v41  ;;  %v266_v47 = vpop.permute.xlu1 %265  ;;  %vm4147_vm10 = vmpackc.low %vm675_vm5, %vm671_vm7  ;;  %vm681_vm5 = vcmp.eq.s32.totalorder %v5190_v23, %v5043_v35  ;;  %vm688_vm8 = vcmp.eq.s32.totalorder %v5198_v26, %v5031_v30  ;;  %v123_v23 = vld [vmem:[%s7260_s0 + $0x338] sm:$0xff] }
 0x125   :  { %2816 = vmatmul.mubr.f32.vlgmr.msra.gmra.mrb[0].mxu1 %v4646_v43  ;;  %4148 = vmatpush1.bf16.msk.msra.mxu0 %vm4147_vm10, %v4784_v41  ;;  %vm4403_vm11 = vmpackc.low %vm677_vm6, %vm673_vm9  ;;  %vm684_vm13 = vcmp.eq.s32.totalorder %v266_v47, %v5031_v30  ;;  %vm686_vm0 = vcmp.eq.s32.totalorder %v266_v47, %v5034_v32  ;;  %vm683_vm1 = vcmp.eq.s32.totalorder %v266_v47, %v5022_v27 }
 0x126   :  { %4404 = vmatpush1.bf16.msk.msra.mxu1 %vm4403_vm11, %v4784_v41  ;;  %457 = vperm.xlu1 %4647, %v119_v36   ;;  %vm4149_vm15 = vmpackc.low %vm684_vm13, %vm680_vm12  ;;  %vm685_vm2 = vcmp.eq.s32.totalorder %v266_v47, %v5043_v35  ;;  %v5682_v59 = vpop.permute.xlu0 %406  ;;  %vm690_vm12 = vcmp.eq.s32.totalorder %v5198_v26, %v5034_v32  ;;  %v4685_v36 = vpack.i.bf16 %v2147_v60, %v2163_v39  ;;  %v2148_v47 = vld [vmem:[%s7261_s1 + $0x208] sm:$0xff]  ;;  %v2154_v39 = vld [vmem:[%s7261_s1 + $0x238] sm:$0xff] }
 0x127   :  { %4667 = vxpose.xlu0.b32.cont [10/16] (narrow) %v4666_v17, 8  ;;  %4150 = vmatprep.subr.msk.bf16.mxu0 %vm4149_vm15, %v4784_v41  ;;  %vm4405_vm4 = vmpackc.low %vm686_vm0, %vm682_vm14  ;;  %vm687_vm15 = vcmp.eq.s32.totalorder %v5198_v26, %v5022_v27 }
 0x128   :  { %4406 = vmatprep.subr.msk.bf16.mxu1 %vm4405_vm4, %v4784_v41  ;;  %v272_v56 = vpop.permute.xlu1 %271  ;;  %vm4151_vm6 = vmpackc.low %vm683_vm1, %vm679_vm3  ;;  %vm689_vm1 = vcmp.eq.s32.totalorder %v5198_v26, %v5043_v35  ;;  %vm696_vm4 = vcmp.eq.s32.totalorder %v5206_v31, %v5031_v30  ;;  %v125_v26 = vld [vmem:[%s7260_s0 + $0x348] sm:$0xff] }
 0x129   :  { %4152 = vmatpush1.bf16.msk.msra.mxu0 %vm4151_vm6, %v4784_v41  ;;  %vm4407_vm7 = vmpackc.low %vm685_vm2, %vm681_vm5  ;;  %vm692_vm9 = vcmp.eq.s32.totalorder %v272_v56, %v5031_v30  ;;  %vm694_vm10 = vcmp.eq.s32.totalorder %v272_v56, %v5034_v32  ;;  %vm691_vm13 = vcmp.eq.s32.totalorder %v272_v56, %v5022_v27  ;;  %vm693_vm14 = vcmp.eq.s32.totalorder %v272_v56, %v5043_v35 }
 0x12a   :  { %4408 = vmatpush1.bf16.msk.msra.mxu1 %vm4407_vm7, %v4784_v41  ;;  %463 = vperm.xlu1 %4647, %v121_v20   ;;  %vm4153_vm11 = vmpackc.low %vm692_vm9, %vm688_vm8  ;;  %v5711_v5 = vpop.permute.xlu0 %412  ;;  %vm698_vm8 = vcmp.eq.s32.totalorder %v5206_v31, %v5034_v32  ;;  %v134_v20 = vld [vmem:[%s7260_s0 + $0x390] sm:$0xff] }
 0x12b   :  { %4669 = vxpose.xlu0.b32.cont [11/16] (narrow) %v4668_v53, 8  ;;  %4154 = vmatprep.subr.msk.bf16.mxu0 %vm4153_vm11, %v4784_v41  ;;  %vm4409_vm0 = vmpackc.low %vm694_vm10, %vm690_vm12  ;;  %vm695_vm11 = vcmp.eq.s32.totalorder %v5206_v31, %v5022_v27  ;;  %v4687_v53 = vpack.i.bf16 %v2148_v47, %v2164_v63 }
 0x12c   :  { %4410 = vmatprep.subr.msk.bf16.mxu1 %vm4409_vm0, %v4784_v41  ;;  %v278_v42 = vpop.permute.xlu1 %277  ;;  %vm4155_vm2 = vmpackc.low %vm691_vm13, %vm687_vm15  ;;  %vm697_vm13 = vcmp.eq.s32.totalorder %v5206_v31, %v5043_v35  ;;  %vm704_vm0 = vcmp.eq.s32.totalorder %v5214_v37, %v5031_v30  ;;  %v127_v31 = vld [vmem:[%s7260_s0 + $0x358] sm:$0xff] }
 0x12d   :  { %4156 = vmatpush1.bf16.msk.msra.mxu0 %vm4155_vm2, %v4784_v41  ;;  %vm4411_vm3 = vmpackc.low %vm693_vm14, %vm689_vm1  ;;  %vm700_vm5 = vcmp.eq.s32.totalorder %v278_v42, %v5031_v30  ;;  %vm702_vm6 = vcmp.eq.s32.totalorder %v278_v42, %v5034_v32  ;;  %vm699_vm9 = vcmp.eq.s32.totalorder %v278_v42, %v5022_v27  ;;  %vm701_vm10 = vcmp.eq.s32.totalorder %v278_v42, %v5043_v35 }
 0x12e   :  { %4412 = vmatpush1.bf16.msk.msra.mxu1 %vm4411_vm3, %v4784_v41  ;;  %469 = vperm.xlu1 %4647, %v123_v23   ;;  %vm4157_vm7 = vmpackc.low %vm700_vm5, %vm696_vm4  ;;  %v5747_v3 = vpop.permute.xlu0 %415  ;;  %vm706_vm4 = vcmp.eq.s32.totalorder %v5214_v37, %v5034_v32  ;;  %v135_v23 = vld [vmem:[%s7260_s0 + $0x398] sm:$0xff] }
 0x12f   :  { %4671 = vxpose.xlu0.b32.cont [12/16] (narrow) %v4670_v0, 8  ;;  %4158 = vmatprep.subr.msk.bf16.mxu0 %vm4157_vm7, %v4784_v41  ;;  %vm4413_vm12 = vmpackc.low %vm702_vm6, %vm698_vm8  ;;  %vm703_vm7 = vcmp.eq.s32.totalorder %v5214_v37, %v5022_v27  ;;  %v4689_v0 = vpack.i.bf16 %v2149_v2, %v2165_v61  ;;  %v2156_v2 = vld [vmem:[%s7261_s1 + $0x248] sm:$0xff] }
 0x130   :  { %4414 = vmatprep.subr.msk.bf16.mxu1 %vm4413_vm12, %v4784_v41  ;;  %v284_v11 = vpop.permute.xlu1 %283  ;;  %vm4159_vm14 = vmpackc.low %vm699_vm9, %vm695_vm11  ;;  %vm705_vm9 = vcmp.eq.s32.totalorder %v5214_v37, %v5043_v35  ;;  %vm712_vm12 = vcmp.eq.s32.totalorder %v5222_v40, %v5031_v30  ;;  %v2172_v61 = vld [vmem:[%s7261_s1 + $0x2c8] sm:$0xff] }
 0x131   :  { %4160 = vmatpush1.bf16.msk.msra.mxu0 %vm4159_vm14, %v4784_v41  ;;  %vm4415_vm15 = vmpackc.low %vm701_vm10, %vm697_vm13  ;;  %vm708_vm1 = vcmp.eq.s32.totalorder %v284_v11, %v5031_v30  ;;  %vm710_vm2 = vcmp.eq.s32.totalorder %v284_v11, %v5034_v32  ;;  %vm707_vm5 = vcmp.eq.s32.totalorder %v284_v11, %v5022_v27  ;;  %vm709_vm6 = vcmp.eq.s32.totalorder %v284_v11, %v5043_v35 }
 0x132   :  { %4416 = vmatpush1.bf16.msk.msra.mxu1 %vm4415_vm15, %v4784_v41  ;;  %475 = vperm.xlu1 %4647, %v125_v26   ;;  %vm4161_vm3 = vmpackc.low %vm708_vm1, %vm704_vm0  ;;  %vm714_vm0 = vcmp.eq.s32.totalorder %v5222_v40, %v5034_v32  ;;  %v5785_v37 = vpop.permute.xlu0 %424 }
 0x133   :  { %4673 = vxpose.xlu0.b32.cont [13/16] (narrow) %v4672_v8, 8  ;;  %4162 = vmatprep.subr.msk.bf16.mxu0 %vm4161_vm3, %v4784_v41  ;;  %vm4417_vm8 = vmpackc.low %vm710_vm2, %vm706_vm4  ;;  %vm711_vm3 = vcmp.eq.s32.totalorder %v5222_v40, %v5022_v27  ;;  %v4691_v8 = vpack.i.bf16 %v2150_v6, %v2166_v45  ;;  %v2173_v6 = vld [vmem:[%s7261_s1 + $0x2d0] sm:$0xff] }
 0x134   :  { %4418 = vmatprep.subr.msk.bf16.mxu1 %vm4417_vm8, %v4784_v41  ;;  %v290_v54 = vpop.permute.xlu1 %289  ;;  %vm4163_vm10 = vmpackc.low %vm707_vm5, %vm703_vm7  ;;  %vm713_vm5 = vcmp.eq.s32.totalorder %v5222_v40, %v5043_v35  ;;  %vm720_vm8 = vcmp.eq.s32.totalorder %v5230_v46, %v5031_v30  ;;  %v131_v40 = vld [vmem:[%s7260_s0 + $0x378] sm:$0xff] }
 0x135   :  { %4164 = vmatpush1.bf16.msk.msra.mxu0 %vm4163_vm10, %v4784_v41  ;;  %vm4419_vm11 = vmpackc.low %vm709_vm6, %vm705_vm9  ;;  %vm716_vm13 = vcmp.eq.s32.totalorder %v290_v54, %v5031_v30  ;;  %vm718_vm14 = vcmp.eq.s32.totalorder %v290_v54, %v5034_v32  ;;  %vm715_vm1 = vcmp.eq.s32.totalorder %v290_v54, %v5022_v27  ;;  %vm717_vm2 = vcmp.eq.s32.totalorder %v290_v54, %v5043_v35 }
 0x136   :  { %4420 = vmatpush1.bf16.msk.msra.mxu1 %vm4419_vm11, %v4784_v41  ;;  %481 = vperm.xlu1 %4647, %v127_v31   ;;  %vm4165_vm15 = vmpackc.low %vm716_vm13, %vm712_vm12  ;;  %vm722_vm12 = vcmp.eq.s32.totalorder %v5230_v46, %v5034_v32  ;;  %v5829_v43 = vpop.permute.xlu0 %430  ;;  %v4693_v54 = vpack.i.bf16 %v2151_v51, %v2167_v9  ;;  %v2158_v51 = vld [vmem:[%s7261_s1 + $0x258] sm:$0xff] }
 0x137   :  { %4675 = vxpose.xlu0.b32.cont [14/16] (narrow) %v4674_v16, 8  ;;  %4166 = vmatprep.subr.msk.bf16.mxu0 %vm4165_vm15, %v4784_v41  ;;  %vm4421_vm4 = vmpackc.low %vm718_vm14, %vm714_vm0  ;;  %vm719_vm15 = vcmp.eq.s32.totalorder %v5230_v46, %v5022_v27  ;;  %v137_v16 = vld [vmem:[%s7260_s0 + $0x3a8] sm:$0xff]  ;;  %v2174_v9 = vld [vmem:[%s7261_s1 + $0x2d8] sm:$0xff] }
 0x138   :  { %4422 = vmatprep.subr.msk.bf16.mxu1 %vm4421_vm4, %v4784_v41  ;;  %v296_v57 = vpop.permute.xlu1 %295  ;;  %vm4167_vm6 = vmpackc.low %vm715_vm1, %vm711_vm3  ;;  %vm721_vm1 = vcmp.eq.s32.totalorder %v5230_v46, %v5043_v35  ;;  %vm727_vm3 = vcmp.eq.s32.totalorder %v5238_v52, %v5022_v27  ;;  %v133_v46 = vld [vmem:[%s7260_s0 + $0x388] sm:$0xff] }
 0x139   :  { %4168 = vmatpush1.bf16.msk.msra.mxu0 %vm4167_vm6, %v4784_v41  ;;  %vm4423_vm7 = vmpackc.low %vm717_vm2, %vm713_vm5  ;;  %vm724_vm9 = vcmp.eq.s32.totalorder %v296_v57, %v5031_v30  ;;  %vm726_vm10 = vcmp.eq.s32.totalorder %v296_v57, %v5034_v32  ;;  %vm723_vm13 = vcmp.eq.s32.totalorder %v296_v57, %v5022_v27  ;;  %vm725_vm14 = vcmp.eq.s32.totalorder %v296_v57, %v5043_v35 }
 0x13a   :  { %4424 = vmatpush1.bf16.msk.msra.mxu1 %vm4423_vm7, %v4784_v41  ;;  %487 = vperm.xlu1 %4647, %v129_v21   ;;  %vm4169_vm11 = vmpackc.low %vm724_vm9, %vm720_vm8  ;;  %vm728_vm6 = vcmp.eq.s32.totalorder %v5238_v52, %v5031_v30  ;;  %v5872_v50 = vpop.permute.xlu0 %436  ;;  %v2168_v21 = vld [vmem:[%s7261_s1 + $0x2a8] sm:$0xff] }
 0x13b   :  { %4677 = vxpose.xlu0.b32.cont [15/16] (narrow) %v4676_v24, 8  ;;  %4170 = vmatprep.subr.msk.bf16.mxu0 %vm4169_vm11, %v4784_v41  ;;  %vm4425_vm0 = vmpackc.low %vm726_vm10, %vm722_vm12  ;;  %vm730_vm12 = vcmp.eq.s32.totalorder %v5238_v52, %v5034_v32  ;;  %v138_v24 = vld [vmem:[%s7260_s0 + $0x3b0] sm:$0xff]  ;;  %v4695_v57 = vpack.i.bf16 %v2152_v12, %v2168_v21  ;;  %v2175_v12 = vld [vmem:[%s7261_s1 + $0x2e0] sm:$0xff] }
 0x13c   :  { %4426 = vmatprep.subr.msk.bf16.mxu1 %vm4425_vm0, %v4784_v41  ;;  %v302_v34 = vpop.permute.xlu1 %301  ;;  %vm4171_vm2 = vmpackc.low %vm723_vm13, %vm719_vm15  ;;  %vm729_vm13 = vcmp.eq.s32.totalorder %v5238_v52, %v5043_v35  ;;  %vm735_vm15 = vcmp.eq.s32.totalorder %v5246_v58, %v5022_v27  ;;  %v2155_v52 = vld [vmem:[%s7261_s1 + $0x240] sm:$0xff] }
 0x13d   :  { %vm731_vm4 = vcmp.eq.s32.totalorder %v302_v34, %v5022_v27  ;;  %4172 = vmatpush1.bf16.msk.msra.mxu0 %vm4171_vm2, %v4784_v41  ;;  %vm4427_vm5 = vmpackc.low %vm725_vm14, %vm721_vm1  ;;  %vm733_vm7 = vcmp.eq.s32.totalorder %v302_v34, %v5043_v35  ;;  %vm732_vm8 = vcmp.eq.s32.totalorder %v302_v34, %v5031_v30  ;;  %vm734_vm9 = vcmp.eq.s32.totalorder %v302_v34, %v5034_v32 }
 0x13e   :  { %4428 = vmatpush1.bf16.msk.msra.mxu1 %vm4427_vm5, %v4784_v41  ;;  %493 = vperm.xlu1 %4647, %v131_v40   ;;  %vm4175_vm10 = vmpackc.low %vm731_vm4, %vm727_vm3  ;;  %vm736_vm2 = vcmp.eq.s32.totalorder %v5246_v58, %v5031_v30  ;;  %v5923_v26 = vpop.permute.xlu0 %442  ;;  %v2169_v40 = vld [vmem:[%s7261_s1 + $0x2b0] sm:$0xff] }
 0x13f   :  { %4679 = vxpose.xlu0.b32.end [16/16] (narrow) %v4678_v29, 8  ;;  %vm4173_vm11 = vmpackc.low %vm732_vm8, %vm728_vm6  ;;  %vm738_vm8 = vcmp.eq.s32.totalorder %v5246_v58, %v5034_v32  ;;  %v4697_v34 = vpack.i.bf16 %v2153_v14, %v2169_v40  ;;  %v2176_v14 = vld [vmem:[%s7261_s1 + $0x2e8] sm:$0xff] }
 0x140   :  { %4174 = vmatprep.subr.msk.bf16.mxu0 %vm4173_vm11, %v4784_v41  ;;  %vm4429_vm14 = vmpackc.low %vm734_vm9, %vm730_vm12  ;;  %v308_v17 = vpop.permute.xlu1 %307  ;;  %vm737_vm9 = vcmp.eq.s32.totalorder %v5246_v58, %v5043_v35  ;;  %vm743_vm11 = vcmp.eq.s32.totalorder %v5261_v62, %v5022_v27 }
 0x141   :  { %4430 = vmatprep.subr.msk.bf16.mxu1 %vm4429_vm14, %v4784_v41  ;;  %vm739_vm0 = vcmp.eq.s32.totalorder %v308_v17, %v5022_v27  ;;  %4176 = vmatpush1.bf16.msk.msra.mxu0 %vm4175_vm10, %v4784_v41  ;;  %vm4431_vm1 = vmpackc.low %vm733_vm7, %vm729_vm13  ;;  %vm741_vm3 = vcmp.eq.s32.totalorder %v308_v17, %v5043_v35  ;;  %vm740_vm4 = vcmp.eq.s32.totalorder %v308_v17, %v5031_v30 }
 0x142   :  { %4432 = vmatpush1.bf16.msk.msra.mxu1 %vm4431_vm1, %v4784_v41  ;;  %499 = vperm.xlu1 %4647, %v133_v46   ;;  %vm742_vm5 = vcmp.eq.s32.totalorder %v308_v17, %v5034_v32  ;;  %vm5868_vm6 = vmpackc.low %vm739_vm0, %vm735_vm15  ;;  %vm744_vm14 = vcmp.eq.s32.totalorder %v5261_v62, %v5031_v30  ;;  %v5969_v31 = vpop.permute.xlu0 %448  ;;  %v2170_v46 = vld [vmem:[%s7261_s1 + $0x2b8] sm:$0xff]  ;;  %v140_v17 = vld [vmem:[%s7260_s0 + $0x3c0] sm:$0xff] }
 0x143   :  { %4686 = vxpose.xlu0.b32.start [1/16] (narrow) %v4685_v36, 8  ;;  %vm4177_vm7 = vmpackc.low %vm740_vm4, %vm736_vm2  ;;  %v4699_v47 = vpack.i.bf16 %v2154_v39, %v2170_v46  ;;  %v2161_v39 = vld [vmem:[%s7261_s1 + $0x270] sm:$0xff] }
 0x144   :  { %4178 = vmatprep.subr.msk.bf16.mxu0 %vm4177_vm7, %v4784_v41  ;;  %vm4433_vm10 = vmpackc.low %vm742_vm5, %vm738_vm8  ;;  %v314_v56 = vpop.permute.xlu1 %313  ;;  %vm745_vm5 = vcmp.eq.s32.totalorder %v5261_v62, %v5043_v35  ;;  %vm751_vm7 = vcmp.eq.s32.totalorder %v5282_v4, %v5022_v27  ;;  %v2177_v46 = vld [vmem:[%s7261_s1 + $0x2f0] sm:$0xff] }
 0x145   :  { %4434 = vmatprep.subr.msk.bf16.mxu1 %vm4433_vm10, %v4784_v41  ;;  %vm747_vm12 = vcmp.eq.s32.totalorder %v314_v56, %v5022_v27  ;;  %4180 = vmatpush1.bf16.msk.msra.mxu0 %vm5868_vm6, %v4784_v41  ;;  %vm4435_vm13 = vmpackc.low %vm741_vm3, %vm737_vm9  ;;  %vm749_vm15 = vcmp.eq.s32.totalorder %v314_v56, %v5043_v35  ;;  %vm748_vm0 = vcmp.eq.s32.totalorder %v314_v56, %v5031_v30 }
 0x146   :  { %4436 = vmatpush1.bf16.msk.msra.mxu1 %vm4435_vm13, %v4784_v41  ;;  %502 = vperm.xlu1 %4647, %v134_v20   ;;  %vm750_vm1 = vcmp.eq.s32.totalorder %v314_v56, %v5034_v32  ;;  %vm5903_vm2 = vmpackc.low %vm747_vm12, %vm743_vm11  ;;  %vm746_vm3 = vcmp.eq.s32.totalorder %v5261_v62, %v5034_v32  ;;  %vm752_vm10 = vcmp.eq.s32.totalorder %v5282_v4, %v5031_v30  ;;  %v136_v62 = vld [vmem:[%s7260_s0 + $0x3a0] sm:$0xff]  ;;  %v6020_v29 = vpop.permute.xlu0 %454 }
 0x147   :  { %4688 = vxpose.xlu0.b32.cont [2/16] (narrow) %v4687_v53, 8  ;;  %vm4181_vm4 = vmpackc.low %vm748_vm0, %vm744_vm14  ;;  %v2171_v20 = vld [vmem:[%s7261_s1 + $0x2c0] sm:$0xff] }
 0x148   :  { %4182 = vmatprep.subr.msk.bf16.mxu0 %vm4181_vm4, %v4784_v41  ;;  %vm4437_vm6 = vmpackc.low %vm750_vm1, %vm746_vm3  ;;  %v320_v42 = vpop.permute.xlu1 %319  ;;  %vm754_vm1 = vcmp.eq.s32.totalorder %v5282_v4, %v5034_v32  ;;  %vm759_vm4 = vcmp.eq.s32.totalorder %v5303_v7, %v5022_v27  ;;  %v4701_v53 = vpack.i.bf16 %v2155_v52, %v2171_v20  ;;  %v2178_v52 = vld [vmem:[%s7261_s1 + $0x2f8] sm:$0xff] }
 0x149   :  { %4438 = vmatprep.subr.msk.bf16.mxu1 %vm4437_vm6, %v4784_v41  ;;  %vm755_vm8 = vcmp.eq.s32.totalorder %v320_v42, %v5022_v27  ;;  %4184 = vmatpush1.bf16.msk.msra.mxu0 %vm5903_vm2, %v4784_v41  ;;  %vm4439_vm9 = vmpackc.low %vm749_vm15, %vm745_vm5  ;;  %vm757_vm11 = vcmp.eq.s32.totalorder %v320_v42, %v5043_v35  ;;  %vm756_vm12 = vcmp.eq.s32.totalorder %v320_v42, %v5031_v30 }
 0x14a   :  { %4440 = vmatpush1.bf16.msk.msra.mxu1 %vm4439_vm9, %v4784_v41  ;;  %505 = vperm.xlu1 %4647, %v135_v23   ;;  %vm758_vm13 = vcmp.eq.s32.totalorder %v320_v42, %v5034_v32  ;;  %vm4187_vm14 = vmpackc.low %vm755_vm8, %vm751_vm7  ;;  %vm753_vm15 = vcmp.eq.s32.totalorder %v5282_v4, %v5043_v35  ;;  %vm760_vm6 = vcmp.eq.s32.totalorder %v5303_v7, %v5031_v30  ;;  %v6066_v36 = vpop.permute.xlu0 %460  ;;  %v2157_v42 = vld [vmem:[%s7261_s1 + $0x250] sm:$0xff]  ;;  %v144_v4 = vld [vmem:[%s7260_s0 + $0x3e0] sm:$0xff] }
 0x14b   :  { %4690 = vxpose.xlu0.b32.cont [3/16] (narrow) %v4689_v0, 8  ;;  %vm4185_vm0 = vmpackc.low %vm756_vm12, %vm752_vm10  ;;  %vm762_vm12 = vcmp.eq.s32.totalorder %v5303_v7, %v5034_v32  ;;  %v4703_v23 = vpack.i.bf16 %v2156_v2, %v2172_v61 }
 0x14c   :  { %4186 = vmatprep.subr.msk.bf16.mxu0 %vm4185_vm0, %v4784_v41  ;;  %vm4441_vm2 = vmpackc.low %vm758_vm13, %vm754_vm1  ;;  %v326_v11 = vpop.permute.xlu1 %325  ;;  %vm761_vm13 = vcmp.eq.s32.totalorder %v5303_v7, %v5043_v35  ;;  %vm767_vm0 = vcmp.eq.s32.totalorder %v5324_v10, %v5022_v27  ;;  %v145_v7 = vld [vmem:[%s7260_s0 + $0x3e8] sm:$0xff] }
 0x14d   :  { %4442 = vmatprep.subr.msk.bf16.mxu1 %vm4441_vm2, %v4784_v41  ;;  %vm763_vm3 = vcmp.eq.s32.totalorder %v326_v11, %v5022_v27  ;;  %4188 = vmatpush1.bf16.msk.msra.mxu0 %vm4187_vm14, %v4784_v41  ;;  %vm4443_vm5 = vmpackc.low %vm757_vm11, %vm753_vm15  ;;  %vm765_vm7 = vcmp.eq.s32.totalorder %v326_v11, %v5043_v35  ;;  %vm764_vm8 = vcmp.eq.s32.totalorder %v326_v11, %v5031_v30 }
 0x14e   :  { %4444 = vmatpush1.bf16.msk.msra.mxu1 %vm4443_vm5, %v4784_v41  ;;  %508 = vperm.xlu1 %4647, %v136_v62   ;;  %vm766_vm9 = vcmp.eq.s32.totalorder %v326_v11, %v5034_v32  ;;  %vm5965_vm10 = vmpackc.low %vm763_vm3, %vm759_vm4  ;;  %vm768_vm2 = vcmp.eq.s32.totalorder %v5324_v10, %v5031_v30  ;;  %v6113_v58 = vpop.permute.xlu0 %466  ;;  %v143_v62 = vld [vmem:[%s7260_s0 + $0x3d8] sm:$0xff] }
 0x14f   :  { %4692 = vxpose.xlu0.b32.cont [4/16] (narrow) %v4691_v8, 8  ;;  %vm4189_vm11 = vmpackc.low %vm764_vm8, %vm760_vm6  ;;  %v4705_v8 = vpack.i.bf16 %v2157_v42, %v2173_v6 }
 0x150   :  { %4190 = vmatprep.subr.msk.bf16.mxu0 %vm4189_vm11, %v4784_v41  ;;  %vm4445_vm14 = vmpackc.low %vm766_vm9, %vm762_vm12  ;;  %v332_v19 = vpop.permute.xlu1 %331  ;;  %vm769_vm9 = vcmp.eq.s32.totalorder %v5324_v10, %v5043_v35  ;;  %vm775_vm11 = vcmp.eq.s32.totalorder %v5345_v13, %v5022_v27 }
 0x151   :  { %4446 = vmatprep.subr.msk.bf16.mxu1 %vm4445_vm14, %v4784_v41  ;;  %vm771_vm1 = vcmp.eq.s32.totalorder %v332_v19, %v5022_v27  ;;  %4192 = vmatpush1.bf16.msk.msra.mxu0 %vm5965_vm10, %v4784_v41  ;;  %vm4447_vm15 = vmpackc.low %vm765_vm7, %vm761_vm13  ;;  %vm773_vm4 = vcmp.eq.s32.totalorder %v332_v19, %v5043_v35  ;;  %vm772_vm3 = vcmp.eq.s32.totalorder %v332_v19, %v5031_v30 }
 0x152   :  { %4448 = vmatpush1.bf16.msk.msra.mxu1 %vm4447_vm15, %v4784_v41  ;;  %511 = vperm.xlu1 %4647, %v137_v16   ;;  %vm774_vm5 = vcmp.eq.s32.totalorder %v332_v19, %v5034_v32  ;;  %vm6000_vm6 = vmpackc.low %vm771_vm1, %vm767_vm0  ;;  %vm770_vm7 = vcmp.eq.s32.totalorder %v5324_v10, %v5034_v32  ;;  %vm776_vm14 = vcmp.eq.s32.totalorder %v5345_v13, %v5031_v30  ;;  %v139_v10 = vld [vmem:[%s7260_s0 + $0x3b8] sm:$0xff]  ;;  %v6141_v45 = vpop.permute.xlu0 %472  ;;  %v2159_v19 = vld [vmem:[%s7261_s1 + $0x260] sm:$0xff] }
 0x153   :  { %4694 = vxpose.xlu0.b32.cont [5/16] (narrow) %v4693_v54, 8  ;;  %vm4193_vm8 = vmpackc.low %vm772_vm3, %vm768_vm2  ;;  %v4707_v16 = vpack.i.bf16 %v2158_v51, %v2174_v9  ;;  %v2188_v9 = vld [vmem:[%s7261_s1 + $0x348] sm:$0xff] }
 0x154   :  { %4194 = vmatprep.subr.msk.bf16.mxu0 %vm4193_vm8, %v4784_v41  ;;  %vm4449_vm10 = vmpackc.low %vm774_vm5, %vm770_vm7  ;;  %v338_v28 = vpop.permute.xlu1 %337  ;;  %vm778_vm5 = vcmp.eq.s32.totalorder %v5345_v13, %v5034_v32  ;;  %vm783_vm8 = vcmp.eq.s32.totalorder %v5366_v15, %v5022_v27 }
 0x155   :  { %4450 = vmatprep.subr.msk.bf16.mxu1 %vm4449_vm10, %v4784_v41  ;;  %vm779_vm12 = vcmp.eq.s32.totalorder %v338_v28, %v5022_v27  ;;  %4196 = vmatpush1.bf16.msk.msra.mxu0 %vm6000_vm6, %v4784_v41  ;;  %vm4451_vm13 = vmpackc.low %vm773_vm4, %vm769_vm9  ;;  %vm781_vm0 = vcmp.eq.s32.totalorder %v338_v28, %v5043_v35  ;;  %vm780_vm1 = vcmp.eq.s32.totalorder %v338_v28, %v5031_v30 }
 0x156   :  { %4452 = vmatpush1.bf16.msk.msra.mxu1 %vm4451_vm13, %v4784_v41  ;;  %514 = vperm.xlu1 %4647, %v138_v24   ;;  %vm782_vm15 = vcmp.eq.s32.totalorder %v338_v28, %v5034_v32  ;;  %vm4199_vm2 = vmpackc.low %vm779_vm12, %vm775_vm11  ;;  %vm777_vm4 = vcmp.eq.s32.totalorder %v5345_v13, %v5043_v35  ;;  %vm784_vm10 = vcmp.eq.s32.totalorder %v5366_v15, %v5031_v30  ;;  %v6165_v21 = vpop.permute.xlu0 %478  ;;  %v2160_v28 = vld [vmem:[%s7261_s1 + $0x268] sm:$0xff]  ;;  %v147_v13 = vld [vmem:[%s7260_s0 + $0x3f8] sm:$0xff] }
 0x157   :  { %4696 = vxpose.xlu0.b32.cont [6/16] (narrow) %v4695_v57, 8  ;;  %vm4197_vm3 = vmpackc.low %vm780_vm1, %vm776_vm14  ;;  %vm786_vm1 = vcmp.eq.s32.totalorder %v5366_v15, %v5034_v32  ;;  %v4709_v24 = vpack.i.bf16 %v2159_v19, %v2175_v12  ;;  %v2189_v12 = vld [vmem:[%s7261_s1 + $0x350] sm:$0xff] }
 0x158   :  { %4198 = vmatprep.subr.msk.bf16.mxu0 %vm4197_vm3, %v4784_v41  ;;  %vm4453_vm6 = vmpackc.low %vm782_vm15, %vm778_vm5  ;;  %v344_v60 = vpop.permute.xlu1 %343  ;;  %vm785_vm15 = vcmp.eq.s32.totalorder %v5366_v15, %v5043_v35  ;;  %vm791_vm3 = vcmp.eq.s32.totalorder %v5393_v22, %v5022_v27  ;;  %v141_v15 = vld [vmem:[%s7260_s0 + $0x3c8] sm:$0xff] }
 0x159   :  { %4454 = vmatprep.subr.msk.bf16.mxu1 %vm4453_vm6, %v4784_v41  ;;  %vm787_vm7 = vcmp.eq.s32.totalorder %v344_v60, %v5022_v27  ;;  %4200 = vmatpush1.bf16.msk.msra.mxu0 %vm4199_vm2, %v4784_v41  ;;  %vm4455_vm9 = vmpackc.low %vm781_vm0, %vm777_vm4  ;;  %vm789_vm11 = vcmp.eq.s32.totalorder %v344_v60, %v5043_v35  ;;  %vm788_vm12 = vcmp.eq.s32.totalorder %v344_v60, %v5031_v30 }
 0x15a   :  { %4456 = vmatpush1.bf16.msk.msra.mxu1 %vm4455_vm9, %v4784_v41  ;;  %517 = vperm.xlu1 %4647, %v139_v10   ;;  %vm790_vm13 = vcmp.eq.s32.totalorder %v344_v60, %v5034_v32  ;;  %vm6062_vm14 = vmpackc.low %vm787_vm7, %vm783_vm8  ;;  %vm792_vm6 = vcmp.eq.s32.totalorder %v5393_v22, %v5031_v30  ;;  %v6178_v40 = vpop.permute.xlu0 %484  ;;  %v146_v10 = vld [vmem:[%s7260_s0 + $0x3f0] sm:$0xff] }
 0x15b   :  { %4698 = vxpose.xlu0.b32.cont [7/16] (narrow) %v4697_v34, 8  ;;  %vm4201_vm0 = vmpackc.low %vm788_vm12, %vm784_vm10  ;;  %v4711_v34 = vpack.i.bf16 %v2160_v28, %v2176_v14  ;;  %v2196_v28 = vld [vmem:[%s7261_s1 + $0x388] sm:$0xff]  ;;  %v2181_v14 = vld [vmem:[%s7261_s1 + $0x310] sm:$0xff] }
 0x15c   :  { %4202 = vmatprep.subr.msk.bf16.mxu0 %vm4201_vm0, %v4784_v41  ;;  %vm4457_vm2 = vmpackc.low %vm790_vm13, %vm786_vm1  ;;  %v350_v63 = vpop.permute.xlu1 %349  ;;  %vm794_vm13 = vcmp.eq.s32.totalorder %v5393_v22, %v5034_v32  ;;  %vm800_vm1 = vcmp.eq.s32.totalorder %v5420_v33, %v5031_v30 }
 0x15d   :  { %4458 = vmatprep.subr.msk.bf16.mxu1 %vm4457_vm2, %v4784_v41  ;;  %vm795_vm5 = vcmp.eq.s32.totalorder %v350_v63, %v5022_v27  ;;  %4204 = vmatpush1.bf16.msk.msra.mxu0 %vm6062_vm14, %v4784_v41  ;;  %vm4459_vm4 = vmpackc.low %vm789_vm11, %vm785_vm15  ;;  %vm797_vm8 = vcmp.eq.s32.totalorder %v350_v63, %v5043_v35  ;;  %vm796_vm7 = vcmp.eq.s32.totalorder %v350_v63, %v5031_v30 }
 0x15e   :  { %4460 = vmatpush1.bf16.msk.msra.mxu1 %vm4459_vm4, %v4784_v41  ;;  %520 = vperm.xlu1 %4647, %v140_v17   ;;  %vm798_vm9 = vcmp.eq.s32.totalorder %v350_v63, %v5034_v32  ;;  %vm4207_vm10 = vmpackc.low %vm795_vm5, %vm791_vm3  ;;  %vm793_vm11 = vcmp.eq.s32.totalorder %v5393_v22, %v5043_v35  ;;  %vm802_vm5 = vcmp.eq.s32.totalorder %v5420_v33, %v5034_v32  ;;  %v142_v22 = vld [vmem:[%s7260_s0 + $0x3d0] sm:$0xff]  ;;  %v2162_v63 = vld [vmem:[%s7261_s1 + $0x278] sm:$0xff]  ;;  %v6202_v20 = vpop.permute.xlu0 %490 }
 0x15f   :  { %4700 = vxpose.xlu0.b32.cont [8/16] (narrow) %v4699_v47, 8  ;;  %vm4205_vm12 = vmpackc.low %vm796_vm7, %vm792_vm6  ;;  %v4713_v17 = vpack.i.bf16 %v2161_v39, %v2177_v46  ;;  %vm799_vm7 = vcmp.eq.s32.totalorder %v5420_v33, %v5022_v27  ;;  %v2198_v39 = vld [vmem:[%s7261_s1 + $0x398] sm:$0xff] }
 0x160   :  { %4206 = vmatprep.subr.msk.bf16.mxu0 %vm4205_vm12, %v4784_v41  ;;  %vm4461_vm14 = vmpackc.low %vm798_vm9, %vm794_vm13  ;;  %v6105_v56 = vpop.permute.xlu1 %355 }
 0x161   :  { %4462 = vmatprep.subr.msk.bf16.mxu1 %vm4461_vm14, %v4784_v41  ;;  %4208 = vmatpush1.bf16.msk.msra.mxu0 %vm4207_vm10, %v4784_v41  ;;  %vm4463_vm0 = vmpackc.low %vm797_vm8, %vm793_vm11  ;;  %vm804_vm15 = vcmp.eq.s32.totalorder %v6105_v56, %v5031_v30  ;;  %vm806_vm2 = vcmp.eq.s32.totalorder %v6105_v56, %v5034_v32  ;;  %vm803_vm6 = vcmp.eq.s32.totalorder %v6105_v56, %v5022_v27 }
 0x162   :  { %4464 = vmatpush1.bf16.msk.msra.mxu1 %vm4463_vm0, %v4784_v41  ;;  %523 = vperm.xlu1 %4647, %v141_v15   ;;  %vm4209_vm3 = vmpackc.low %vm804_vm15, %vm800_vm1  ;;  %v4715_v15 = vpack.i.bf16 %v2162_v63, %v2178_v52  ;;  %vm805_vm8 = vcmp.eq.s32.totalorder %v6105_v56, %v5043_v35  ;;  %v6210_v2 = vpop.permute.xlu0 %496  ;;  %vm801_vm10 = vcmp.eq.s32.totalorder %v5420_v33, %v5043_v35  ;;  %v2184_v52 = vld [vmem:[%s7261_s1 + $0x328] sm:$0xff]  ;;  %v2201_v56 = vld [vmem:[%s7261_s1 + $0x3b0] sm:$0xff] }
 0x163   :  { %4702 = vxpose.xlu0.b32.cont [9/16] (narrow) %v4701_v53, 8  ;;  %4210 = vmatprep.subr.msk.bf16.mxu0 %vm4209_vm3, %v4784_v41  ;;  %vm4465_vm4 = vmpackc.low %vm806_vm2, %vm802_vm5  ;;  %vm807_vm11 = vcmp.eq.s32.totalorder %v5449_v44, %v5022_v27  ;;  %vm808_vm15 = vcmp.eq.s32.totalorder %v5449_v44, %v5031_v30  ;;  %vm810_vm2 = vcmp.eq.s32.totalorder %v5449_v44, %v5034_v32 }
 0x164   :  { %v6132_v0 = vpop.permute.xlu1 %361  ;;  %4466 = vmatprep.subr.msk.bf16.mxu1 %vm4465_vm4, %v4784_v41  ;;  %vm6220_vm12 = vmpackc.low %vm803_vm6, %vm799_vm7  ;;  %vm809_vm6 = vcmp.eq.s32.totalorder %v5449_v44, %v5043_v35  ;;  %v2204_v44 = vld [vmem:[%s7261_s1 + $0x3c8] sm:$0xff] }
 0x165   :  { %vm811_vm9 = vcmp.eq.s32.totalorder %v6132_v0, %v5022_v27  ;;  %vm812_vm13 = vcmp.eq.s32.totalorder %v6132_v0, %v5031_v30  ;;  %vm6228_vm14 = vmpackc.low %vm805_vm8, %vm801_vm10  ;;  %vm814_vm0 = vcmp.eq.s32.totalorder %v6132_v0, %v5034_v32  ;;  %vm813_vm1 = vcmp.eq.s32.totalorder %v6132_v0, %v5043_v35 }
 0x166   :  { %526 = vperm.xlu1 %4647, %v142_v22   ;;  %vm6240_vm3 = vmpackc.low %vm811_vm9, %vm807_vm11  ;;  %v2185_v22 = vld [vmem:[%s7261_s1 + $0x330] sm:$0xff] }
 0x167   :  { %4704 = vxpose.xlu0.b32.cont [10/16] (narrow) %v4703_v23, 8  ;;  %vm6248_vm4 = vmpackc.low %vm812_vm13, %vm808_vm15  ;;  %vm816_vm13 = vcmp.eq.s32.totalorder %v5478_v55, %v5031_v30  ;;  %vm815_vm15 = vcmp.eq.s32.totalorder %v5478_v55, %v5022_v27  ;;  %v2186_v23 = vld [vmem:[%s7261_s1 + $0x338] sm:$0xff] }
 0x168   :  { %v6146_v11 = vpop.permute.xlu1 %367  ;;  %vm6254_vm8 = vmpackc.low %vm814_vm0, %vm810_vm2  ;;  %vm818_vm0 = vcmp.eq.s32.totalorder %v5478_v55, %v5034_v32 }
 0x169   :  { %vm820_vm5 = vcmp.eq.s32.totalorder %v6146_v11, %v5031_v30  ;;  %vm822_vm7 = vcmp.eq.s32.totalorder %v6146_v11, %v5034_v32  ;;  %vm819_vm9 = vcmp.eq.s32.totalorder %v6146_v11, %v5022_v27  ;;  %vm6265_vm10 = vmpackc.low %vm813_vm1, %vm809_vm6  ;;  %vm884_vm1 = vcmp.eq.s32.totalorder %v5747_v3, %v5031_v30 }
 0x16a   :  { %529 = vperm.xlu1 %4647, %v143_v62   ;;  %vm6274_vm11 = vmpackc.low %vm820_vm5, %vm816_vm13  ;;  %vm886_vm5 = vcmp.eq.s32.totalorder %v5747_v3, %v5034_v32  ;;  %vm883_vm6 = vcmp.eq.s32.totalorder %v5747_v3, %v5022_v27 }
 0x16b   :  { %4706 = vxpose.xlu0.b32.cont [11/16] (narrow) %v4705_v8, 8  ;;  %vm6295_vm2 = vmpackc.low %vm822_vm7, %vm818_vm0  ;;  %vm885_vm7 = vcmp.eq.s32.totalorder %v5747_v3, %v5043_v35  ;;  %v2179_v3 = vld [vmem:[%s7261_s1 + $0x300] sm:$0xff] }
 0x16c   :  { %v6157_v54 = vpop.permute.xlu1 %373  ;;  %v2203_v8 = vld [vmem:[%s7261_s1 + $0x3c0] sm:$0xff] }
 0x16e   :  { %532 = vperm.xlu1 %4647, %v144_v4   ;;  %v4740_v4 = vpack.i.bf16 %v2188_v9, %v2204_v44 }
 0x16f   :  { %4708 = vxpose.xlu0.b32.cont [12/16] (narrow) %v4707_v16, 8 }
 0x170   :  { %v6170_v57 = vpop.permute.xlu1 %379 }
 0x172   :  { %535 = vperm.xlu1 %4647, %v145_v7  }
 0x173   :  { %4710 = vxpose.xlu0.b32.cont [13/16] (narrow) %v4709_v24, 8 }
 0x174   :  { %v6183_v60 = vpop.permute.xlu1 %385 }
 0x176   :  { %538 = vperm.xlu1 %4647, %v146_v10   ;;  %v2197_v10 = vld [vmem:[%s7261_s1 + $0x390] sm:$0xff] }
 0x177   :  { %4712 = vxpose.xlu0.b32.cont [14/16] (narrow) %v4711_v34, 8 }
 0x178   :  { %v6194_v47 = vpop.permute.xlu1 %391 }
 0x17a   :  { %541 = vperm.xlu1 %4647, %v147_v13  }
 0x17b   :  { %4714 = vxpose.xlu0.b32.cont [15/16] (narrow) %v4713_v17, 8  ;;  %v2183_v17 = vld [vmem:[%s7261_s1 + $0x320] sm:$0xff] }
 0x17c   :  { %v6204_v53 = vpop.permute.xlu1 %397 }
 0x17f   :  { %4716 = vxpose.xlu0.b32.end [16/16] (narrow) %v4715_v15, 8  ;;  %v2200_v15 = vld [vmem:[%s7261_s1 + $0x3a8] sm:$0xff] }
 0x180   :  { %v6216_v61 = vpop.permute.xlu1 %403 }
 0x183   :  { %v4680_v33 = vpop.trf.xlu0 }
 0x184   :  { %v4684_v42 = vunpack.i.h.bf16 %v4680_v33  ;;  %v6246_v6 = vpop.permute.xlu1 %409  ;;  %v4681_v62 = vunpack.i.l.bf16 %v4680_v33 }
 0x186   :  { %2602 = vmatprep.mubr.f32.mxu0 %v4681_v62  ;;  %2886 = vmatprep.mubr.f32.mxu1 %v4681_v62  ;;  %v2187_v62 = vld [vmem:[%s7261_s1 + $0x340] sm:$0xff] }
 0x187   :  { %2603 = vmatmul.mubr.f32.vlgmr.msra.gmra.mrb[0].mxu0 %v4684_v42  ;;  %2887 = vmatmul.mubr.f32.vlgmr.msra.gmra.mrb[0].mxu1 %v4684_v42  ;;  %v2202_v42 = vld [vmem:[%s7261_s1 + $0x3b8] sm:$0xff] }
 0x188   :  { %4212 = vmatpush1.bf16.msk.msra.mxu0 %vm6220_vm12, %v4784_v41  ;;  %4468 = vmatpush1.bf16.msk.msra.mxu1 %vm6228_vm14, %v4784_v41  ;;  %v6290_v0 = vpop.permute.xlu1 %418  ;;  %vm6312_vm12 = vmpackc.low %vm819_vm9, %vm815_vm15  ;;  %vm880_vm14 = vcmp.eq.s32.totalorder %v5711_v5, %v5031_v30  ;;  %vm821_vm9 = vcmp.eq.s32.totalorder %v6146_v11, %v5043_v35  ;;  %vm881_vm15 = vcmp.eq.s32.totalorder %v5711_v5, %v5043_v35  ;;  %v7295_v11 = vmov 0 }
 0x189   :  { %4214 = vmatprep.subr.msk.bf16.mxu0 %vm6248_vm4, %v4784_v41  ;;  %4470 = vmatprep.subr.msk.bf16.mxu1 %vm6254_vm8, %v4784_v41  ;;  %vm6320_vm13 = vmpackc.low %vm884_vm1, %vm880_vm14  ;;  %vm882_vm4 = vcmp.eq.s32.totalorder %v5711_v5, %v5034_v32  ;;  %vm879_vm8 = vcmp.eq.s32.totalorder %v5711_v5, %v5022_v27  ;;  %vm828_vm1 = vcmp.eq.s32.totalorder %v6157_v54, %v5031_v30  ;;  %v2190_v5 = vld [vmem:[%s7261_s1 + $0x358] sm:$0xff] }
 0x18a   :  { %vm6330_vm0 = vmpackc.low %vm886_vm5, %vm882_vm4  ;;  %vm817_vm14 = vcmp.eq.s32.totalorder %v5478_v55, %v5043_v35 }
 0x18b   :  { %vm6349_vm5 = vmpackc.low %vm883_vm6, %vm879_vm8  ;;  %vm827_vm6 = vcmp.eq.s32.totalorder %v6157_v54, %v5022_v27 }
 0x18c   :  { %4216 = vmatpush1.bf16.msk.msra.mxu0 %vm6240_vm3, %v4784_v41  ;;  %4472 = vmatpush1.bf16.msk.msra.mxu1 %vm6265_vm10, %v4784_v41  ;;  %v6342_v7 = vpop.permute.xlu1 %421  ;;  %v7296_v11 = vsel %vm6349_vm5, 4294967295, %v7295_v11  ;;  %vm830_vm3 = vcmp.eq.s32.totalorder %v6157_v54, %v5034_v32  ;;  %vm6366_vm10 = vmpackc.low %vm885_vm7, %vm881_vm15  ;;  %vm826_vm5 = vcmp.eq.s32.totalorder %v5507_v1, %v5034_v32  ;;  %vm823_vm7 = vcmp.eq.s32.totalorder %v5507_v1, %v5022_v27 }
 0x18d   :  { %4218 = vmatprep.subr.msk.bf16.mxu0 %vm6274_vm11, %v4784_v41  ;;  %4474 = vmatprep.subr.msk.bf16.mxu1 %vm6295_vm2, %v4784_v41  ;;  %vm4475_vm4 = vmpackc.low %vm821_vm9, %vm817_vm14  ;;  %vm824_vm11 = vcmp.eq.s32.totalorder %v5507_v1, %v5031_v30  ;;  %vm829_vm2 = vcmp.eq.s32.totalorder %v6157_v54, %v5043_v35  ;;  %vm836_vm15 = vcmp.eq.s32.totalorder %v6170_v57, %v5031_v30  ;;  %v2195_v54 = vld [vmem:[%s7261_s1 + $0x380] sm:$0xff] }
 0x18e   :  { %vm4221_vm8 = vmpackc.low %vm828_vm1, %vm824_vm11  ;;  %vm825_vm1 = vcmp.eq.s32.totalorder %v5507_v1, %v5043_v35  ;;  %vm837_vm11 = vcmp.eq.s32.totalorder %v6170_v57, %v5043_v35 }
 0x18f   :  { %vm4477_vm9 = vmpackc.low %vm830_vm3, %vm826_vm5  ;;  %vm835_vm5 = vcmp.eq.s32.totalorder %v6170_v57, %v5022_v27 }
 0x190   :  { %4220 = vmatpush1.bf16.msk.msra.mxu0 %vm6312_vm12, %v4784_v41  ;;  %4476 = vmatpush1.bf16.msk.msra.mxu1 %vm4475_vm4, %v4784_v41  ;;  %v6384_v55 = vpop.permute.xlu1 %427  ;;  %vm4223_vm14 = vmpackc.low %vm827_vm6, %vm823_vm7  ;;  %vm838_vm12 = vcmp.eq.s32.totalorder %v6170_v57, %v5034_v32  ;;  %vm832_vm4 = vcmp.eq.s32.totalorder %v5536_v48, %v5031_v30  ;;  %vm834_vm6 = vcmp.eq.s32.totalorder %v5536_v48, %v5034_v32  ;;  %v2180_v57 = vld [vmem:[%s7261_s1 + $0x308] sm:$0xff] }
 0x191   :  { %4222 = vmatprep.subr.msk.bf16.mxu0 %vm4221_vm8, %v4784_v41  ;;  %4478 = vmatprep.subr.msk.bf16.mxu1 %vm4477_vm9, %v4784_v41  ;;  %vm4479_vm3 = vmpackc.low %vm829_vm2, %vm825_vm1  ;;  %vm831_vm7 = vcmp.eq.s32.totalorder %v5536_v48, %v5022_v27  ;;  %vm844_vm9 = vcmp.eq.s32.totalorder %v6183_v60, %v5031_v30  ;;  %vm833_vm1 = vcmp.eq.s32.totalorder %v5536_v48, %v5043_v35 }
 0x192   :  { %vm4225_vm8 = vmpackc.low %vm836_vm15, %vm832_vm4  ;;  %vm840_vm4 = vcmp.eq.s32.totalorder %v5565_v18, %v5031_v30 }
 0x193   :  { %vm4481_vm2 = vmpackc.low %vm838_vm12, %vm834_vm6  ;;  %vm843_vm12 = vcmp.eq.s32.totalorder %v6183_v60, %v5022_v27 }
 0x194   :  { %4224 = vmatpush1.bf16.msk.msra.mxu0 %vm4223_vm14, %v4784_v41  ;;  %4480 = vmatpush1.bf16.msk.msra.mxu1 %vm4479_vm3, %v4784_v41  ;;  %v6412_v1 = vpop.permute.xlu1 %433  ;;  %vm4227_vm15 = vmpackc.low %vm835_vm5, %vm831_vm7  ;;  %vm846_vm14 = vcmp.eq.s32.totalorder %v6183_v60, %v5034_v32  ;;  %vm842_vm5 = vcmp.eq.s32.totalorder %v5565_v18, %v5034_v32  ;;  %vm839_vm7 = vcmp.eq.s32.totalorder %v5565_v18, %v5022_v27 }
 0x195   :  { %4226 = vmatprep.subr.msk.bf16.mxu0 %vm4225_vm8, %v4784_v41  ;;  %4482 = vmatprep.subr.msk.bf16.mxu1 %vm4481_vm2, %v4784_v41  ;;  %vm4483_vm3 = vmpackc.low %vm837_vm11, %vm833_vm1  ;;  %vm845_vm8 = vcmp.eq.s32.totalorder %v6183_v60, %v5043_v35  ;;  %vm852_vm2 = vcmp.eq.s32.totalorder %v6194_v47, %v5031_v30  ;;  %vm841_vm1 = vcmp.eq.s32.totalorder %v5565_v18, %v5043_v35  ;;  %v2182_v60 = vld [vmem:[%s7261_s1 + $0x318] sm:$0xff] }
 0x196   :  { %vm4229_vm6 = vmpackc.low %vm844_vm9, %vm840_vm4  ;;  %vm848_vm4 = vcmp.eq.s32.totalorder %v5594_v25, %v5031_v30  ;;  %v4728_v13 = vpack.i.bf16 %v2182_v60, %v2198_v39 }
 0x197   :  { %vm4485_vm11 = vmpackc.low %vm846_vm14, %vm842_vm5  ;;  %vm851_vm14 = vcmp.eq.s32.totalorder %v6194_v47, %v5022_v27 }
 0x198   :  { %4228 = vmatpush1.bf16.msk.msra.mxu0 %vm4227_vm15, %v4784_v41  ;;  %4484 = vmatpush1.bf16.msk.msra.mxu1 %vm4483_vm3, %v4784_v41  ;;  %v6440_v48 = vpop.permute.xlu1 %439  ;;  %vm4231_vm9 = vmpackc.low %vm843_vm12, %vm839_vm7  ;;  %vm854_vm15 = vcmp.eq.s32.totalorder %v6194_v47, %v5034_v32  ;;  %vm850_vm12 = vcmp.eq.s32.totalorder %v5594_v25, %v5034_v32  ;;  %vm847_vm7 = vcmp.eq.s32.totalorder %v5594_v25, %v5022_v27 }
 0x199   :  { %4230 = vmatprep.subr.msk.bf16.mxu0 %vm4229_vm6, %v4784_v41  ;;  %4486 = vmatprep.subr.msk.bf16.mxu1 %vm4485_vm11, %v4784_v41  ;;  %vm4487_vm3 = vmpackc.low %vm845_vm8, %vm841_vm1  ;;  %vm853_vm6 = vcmp.eq.s32.totalorder %v6194_v47, %v5043_v35  ;;  %vm860_vm11 = vcmp.eq.s32.totalorder %v6204_v53, %v5031_v30 }
 0x19a   :  { %vm4233_vm5 = vmpackc.low %vm852_vm2, %vm848_vm4  ;;  %vm849_vm2 = vcmp.eq.s32.totalorder %v5594_v25, %v5043_v35  ;;  %vm856_vm4 = vcmp.eq.s32.totalorder %v5623_v38, %v5031_v30  ;;  %v4722_v25 = vpack.i.bf16 %v2179_v3, %v2195_v54  ;;  %v2192_v54 = vld [vmem:[%s7261_s1 + $0x368] sm:$0xff] }
 0x19b   :  { %vm4489_vm8 = vmpackc.low %vm854_vm15, %vm850_vm12  ;;  %vm859_vm15 = vcmp.eq.s32.totalorder %v6204_v53, %v5022_v27 }
 0x19c   :  { %4232 = vmatpush1.bf16.msk.msra.mxu0 %vm4231_vm9, %v4784_v41  ;;  %4488 = vmatpush1.bf16.msk.msra.mxu1 %vm4487_vm3, %v4784_v41  ;;  %v6468_v18 = vpop.permute.xlu1 %445  ;;  %vm4235_vm1 = vmpackc.low %vm851_vm14, %vm847_vm7  ;;  %vm862_vm9 = vcmp.eq.s32.totalorder %v6204_v53, %v5034_v32  ;;  %vm858_vm14 = vcmp.eq.s32.totalorder %v5623_v38, %v5034_v32  ;;  %vm855_vm7 = vcmp.eq.s32.totalorder %v5623_v38, %v5022_v27 }
 0x19d   :  { %4234 = vmatprep.subr.msk.bf16.mxu0 %vm4233_vm5, %v4784_v41  ;;  %4490 = vmatprep.subr.msk.bf16.mxu1 %vm4489_vm8, %v4784_v41  ;;  %vm4491_vm3 = vmpackc.low %vm853_vm6, %vm849_vm2  ;;  %vm861_vm5 = vcmp.eq.s32.totalorder %v6204_v53, %v5043_v35  ;;  %vm868_vm8 = vcmp.eq.s32.totalorder %v6216_v61, %v5031_v30 }
 0x19e   :  { %vm4237_vm12 = vmpackc.low %vm860_vm11, %vm856_vm4  ;;  %vm857_vm11 = vcmp.eq.s32.totalorder %v5623_v38, %v5043_v35  ;;  %vm864_vm4 = vcmp.eq.s32.totalorder %v5653_v49, %v5031_v30  ;;  %v4724_v38 = vpack.i.bf16 %v2180_v57, %v2196_v28  ;;  %v2193_v57 = vld [vmem:[%s7261_s1 + $0x370] sm:$0xff] }
 0x19f   :  { %vm4493_vm6 = vmpackc.low %vm862_vm9, %vm858_vm14  ;;  %vm867_vm9 = vcmp.eq.s32.totalorder %v6216_v61, %v5022_v27  ;;  %v2209_v28 = vld [vmem:[%s7261_s1 + $0x3f0] sm:$0xff] }
 0x1a0   :  { %4236 = vmatpush1.bf16.msk.msra.mxu0 %vm4235_vm1, %v4784_v41  ;;  %4492 = vmatpush1.bf16.msk.msra.mxu1 %vm4491_vm3, %v4784_v41  ;;  %v6502_v24 = vpop.permute.xlu1 %451  ;;  %vm4239_vm2 = vmpackc.low %vm859_vm15, %vm855_vm7  ;;  %vm870_vm1 = vcmp.eq.s32.totalorder %v6216_v61, %v5034_v32  ;;  %vm866_vm15 = vcmp.eq.s32.totalorder %v5653_v49, %v5034_v32  ;;  %vm863_vm7 = vcmp.eq.s32.totalorder %v5653_v49, %v5022_v27 }
 0x1a1   :  { %4238 = vmatprep.subr.msk.bf16.mxu0 %vm4237_vm12, %v4784_v41  ;;  %4494 = vmatprep.subr.msk.bf16.mxu1 %vm4493_vm6, %v4784_v41  ;;  %vm4495_vm3 = vmpackc.low %vm861_vm5, %vm857_vm11  ;;  %vm869_vm12 = vcmp.eq.s32.totalorder %v6216_v61, %v5043_v35  ;;  %vm876_vm6 = vcmp.eq.s32.totalorder %v6246_v6, %v5031_v30  ;;  %v4732_v61 = vpack.i.bf16 %v2184_v52, %v2200_v15 }
 0x1a2   :  { %vm4241_vm14 = vmpackc.low %vm868_vm8, %vm864_vm4  ;;  %vm865_vm8 = vcmp.eq.s32.totalorder %v5653_v49, %v5043_v35  ;;  %vm875_vm4 = vcmp.eq.s32.totalorder %v6246_v6, %v5022_v27  ;;  %v4726_v49 = vpack.i.bf16 %v2181_v14, %v2197_v10  ;;  %v2194_v14 = vld [vmem:[%s7261_s1 + $0x378] sm:$0xff] }
 0x1a3   :  { %4723 = vxpose.xlu1.b32.start [1/16] (narrow) %v4722_v25, 8  ;;  %vm4497_vm5 = vmpackc.low %vm870_vm1, %vm866_vm15  ;;  %vm874_vm15 = vcmp.eq.s32.totalorder %v5682_v59, %v5034_v32  ;;  %v2208_v25 = vld [vmem:[%s7261_s1 + $0x3e8] sm:$0xff]  ;;  %v2210_v10 = vld [vmem:[%s7261_s1 + $0x3f8] sm:$0xff] }
 0x1a4   :  { %4240 = vmatpush1.bf16.msk.msra.mxu0 %vm4239_vm2, %v4784_v41  ;;  %4496 = vmatpush1.bf16.msk.msra.mxu1 %vm4495_vm3, %v4784_v41  ;;  %vm4243_vm11 = vmpackc.low %vm867_vm9, %vm863_vm7  ;;  %vm878_vm2 = vcmp.eq.s32.totalorder %v6246_v6, %v5034_v32  ;;  %vm872_vm3 = vcmp.eq.s32.totalorder %v5682_v59, %v5031_v30  ;;  %vm877_vm9 = vcmp.eq.s32.totalorder %v6246_v6, %v5043_v35 }
 0x1a5   :  { %v6546_v34 = vpop.permute.xlu1 %457  ;;  %4242 = vmatprep.subr.msk.bf16.mxu0 %vm4241_vm14, %v4784_v41  ;;  %4498 = vmatprep.subr.msk.bf16.mxu1 %vm4497_vm5, %v4784_v41  ;;  %vm4499_vm1 = vmpackc.low %vm869_vm12, %vm865_vm8  ;;  %vm871_vm7 = vcmp.eq.s32.totalorder %v5682_v59, %v5022_v27  ;;  %vm873_vm5 = vcmp.eq.s32.totalorder %v5682_v59, %v5043_v35  ;;  %v2199_v59 = vld [vmem:[%s7261_s1 + $0x3a0] sm:$0xff] }
 0x1a6   :  { %vm4245_vm14 = vmpackc.low %vm876_vm6, %vm872_vm3  ;;  %vm888_vm3 = vcmp.eq.s32.totalorder %v6290_v0, %v5031_v30  ;;  %v4730_v63 = vpack.i.bf16 %v2183_v17, %v2199_v59 }
 0x1a7   :  { %4725 = vxpose.xlu1.b32.cont [2/16] (narrow) %v4724_v38, 8  ;;  %vm4501_vm12 = vmpackc.low %vm878_vm2, %vm874_vm15  ;;  %vm894_vm2 = vcmp.eq.s32.totalorder %v6342_v7, %v5034_v32  ;;  %vm7299_vm15 = vnez %v7296_v11 }
 0x1a8   :  { %4244 = vmatpush1.bf16.msk.msra.mxu0 %vm4243_vm11, %v4784_v41  ;;  %4500 = vmatpush1.bf16.msk.msra.mxu1 %vm4499_vm1, %v4784_v41  ;;  %vm4247_vm6 = vmpackc.low %vm875_vm4, %vm871_vm7  ;;  %vm892_vm11 = vcmp.eq.s32.totalorder %v6342_v7, %v5031_v30  ;;  %vm891_vm1 = vcmp.eq.s32.totalorder %v6342_v7, %v5022_v27  ;;  %vm893_vm4 = vcmp.eq.s32.totalorder %v6342_v7, %v5043_v35  ;;  %v2205_v7 = vld [vmem:[%s7261_s1 + $0x3d0] sm:$0xff] }
 0x1a9   :  { %v6576_v46 = vpop.permute.xlu1 %463  ;;  %4246 = vmatprep.subr.msk.bf16.mxu0 %vm4245_vm14, %v4784_v41  ;;  %4502 = vmatprep.subr.msk.bf16.mxu1 %vm4501_vm12, %v4784_v41  ;;  %vm4503_vm8 = vmpackc.low %vm877_vm9, %vm873_vm5  ;;  %vm900_vm12 = vcmp.eq.s32.totalorder %v6384_v55, %v5031_v30  ;;  %vm889_vm7 = vcmp.eq.s32.totalorder %v6290_v0, %v5043_v35  ;;  %vm902_vm5 = vcmp.eq.s32.totalorder %v6384_v55, %v5034_v32 }
 0x1aa   :  { %vm4253_vm14 = vmpackc.low %vm892_vm11, %vm888_vm3  ;;  %vm896_vm11 = vcmp.eq.s32.totalorder %v5785_v37, %v5031_v30 }
 0x1ab   :  { %4727 = vxpose.xlu1.b32.cont [3/16] (narrow) %v4726_v49, 8  ;;  %vm4257_vm3 = vmpackc.low %vm900_vm12, %vm896_vm11  ;;  %vm907_vm12 = vcmp.eq.s32.totalorder %v6412_v1, %v5022_v27  ;;  %vm903_vm11 = vcmp.eq.s32.totalorder %v5829_v43, %v5022_v27 }
 0x1ac   :  { %4248 = vmatpush1.bf16.msk.msra.mxu0 %vm4247_vm6, %v4784_v41  ;;  %4504 = vmatpush1.bf16.msk.msra.mxu1 %vm4503_vm8, %v4784_v41  ;;  %vm899_vm6 = vcmp.eq.s32.totalorder %v6384_v55, %v5022_v27  ;;  %vm4511_vm8 = vmpackc.low %vm893_vm4, %vm889_vm7 }
 0x1ad   :  { %v6595_v47 = vpop.permute.xlu1 %469  ;;  %4250 = vmatprep.subr.msk.bf16.mxu0 %vm6320_vm13, %v4784_v41  ;;  %4506 = vmatprep.subr.msk.bf16.mxu1 %vm6330_vm0, %v4784_v41  ;;  %vm890_vm13 = vcmp.eq.s32.totalorder %v6290_v0, %v5034_v32  ;;  %vm887_vm0 = vcmp.eq.s32.totalorder %v6290_v0, %v5022_v27 }
 0x1ae   :  { %vm4509_vm9 = vmpackc.low %vm894_vm2, %vm890_vm13  ;;  %vm901_vm2 = vcmp.eq.s32.totalorder %v6384_v55, %v5043_v35  ;;  %vm908_vm13 = vcmp.eq.s32.totalorder %v6412_v1, %v5031_v30  ;;  %v2206_v55 = vld [vmem:[%s7261_s1 + $0x3d8] sm:$0xff] }
 0x1af   :  { %4729 = vxpose.xlu1.b32.cont [4/16] (narrow) %v4728_v13, 8 }
 0x1b0   :  { %4252 = vmatpush1.bf16.msk.msra.mxu0 %vm7299_vm15, %v4784_v41  ;;  %4508 = vmatpush1.bf16.msk.msra.mxu1 %vm6366_vm10, %v4784_v41  ;;  %vm4255_vm10 = vmpackc.low %vm891_vm1, %vm887_vm0  ;;  %vm898_vm1 = vcmp.eq.s32.totalorder %v5785_v37, %v5034_v32  ;;  %vm897_vm0 = vcmp.eq.s32.totalorder %v5785_v37, %v5043_v35 }
 0x1b1   :  { %v6631_v53 = vpop.permute.xlu1 %475  ;;  %4254 = vmatprep.subr.msk.bf16.mxu0 %vm4253_vm14, %v4784_v41  ;;  %4510 = vmatprep.subr.msk.bf16.mxu1 %vm4509_vm9, %v4784_v41  ;;  %vm895_vm14 = vcmp.eq.s32.totalorder %v5785_v37, %v5022_v27  ;;  %vm4513_vm4 = vmpackc.low %vm902_vm5, %vm898_vm1  ;;  %vm910_vm9 = vcmp.eq.s32.totalorder %v6412_v1, %v5034_v32  ;;  %vm909_vm5 = vcmp.eq.s32.totalorder %v6412_v1, %v5043_v35 }
 0x1b2   :  { %vm4259_vm15 = vmpackc.low %vm899_vm6, %vm895_vm14  ;;  %vm906_vm6 = vcmp.eq.s32.totalorder %v5829_v43, %v5034_v32  ;;  %v4734_v37 = vpack.i.bf16 %v2185_v22, %v2201_v56  ;;  %vm905_vm1 = vcmp.eq.s32.totalorder %v5829_v43, %v5043_v35 }
 0x1b3   :  { %4731 = vxpose.xlu1.b32.cont [5/16] (narrow) %v4730_v63, 8  ;;  %vm4515_vm7 = vmpackc.low %vm901_vm2, %vm897_vm0 }
 0x1b4   :  { %4256 = vmatpush1.bf16.msk.msra.mxu0 %vm4255_vm10, %v4784_v41  ;;  %4512 = vmatpush1.bf16.msk.msra.mxu1 %vm4511_vm8, %v4784_v41  ;;  %vm904_vm10 = vcmp.eq.s32.totalorder %v5829_v43, %v5031_v30  ;;  %vm4517_vm2 = vmpackc.low %vm910_vm9, %vm906_vm6  ;;  %vm917_vm9 = vcmp.eq.s32.totalorder %v6440_v48, %v5043_v35  ;;  %v4736_v43 = vpack.i.bf16 %v2186_v23, %v2202_v42 }
 0x1b5   :  { %v6665_v33 = vpop.permute.xlu1 %481  ;;  %4258 = vmatprep.subr.msk.bf16.mxu0 %vm4257_vm3, %v4784_v41  ;;  %4514 = vmatprep.subr.msk.bf16.mxu1 %vm4513_vm4, %v4784_v41  ;;  %vm4261_vm8 = vmpackc.low %vm908_vm13, %vm904_vm10  ;;  %vm916_vm3 = vcmp.eq.s32.totalorder %v6440_v48, %v5031_v30  ;;  %vm918_vm4 = vcmp.eq.s32.totalorder %v6440_v48, %v5034_v32  ;;  %vm915_vm13 = vcmp.eq.s32.totalorder %v6440_v48, %v5022_v27  ;;  %v2191_v48 = vld [vmem:[%s7261_s1 + $0x360] sm:$0xff] }
 0x1b6   :  { %vm4263_vm14 = vmpackc.low %vm907_vm12, %vm903_vm11  ;;  %vm914_vm12 = vcmp.eq.s32.totalorder %v5872_v50, %v5034_v32  ;;  %vm911_vm10 = vcmp.eq.s32.totalorder %v5872_v50, %v5022_v27  ;;  %vm913_vm6 = vcmp.eq.s32.totalorder %v5872_v50, %v5043_v35 }
 0x1b7   :  { %4733 = vxpose.xlu1.b32.cont [6/16] (narrow) %v4732_v61, 8  ;;  %vm4519_vm0 = vmpackc.low %vm909_vm5, %vm905_vm1 }
 0x1b8   :  { %4260 = vmatpush1.bf16.msk.msra.mxu0 %vm4259_vm15, %v4784_v41  ;;  %4516 = vmatpush1.bf16.msk.msra.mxu1 %vm4515_vm7, %v4784_v41  ;;  %vm912_vm15 = vcmp.eq.s32.totalorder %v5872_v50, %v5031_v30  ;;  %vm4521_vm5 = vmpackc.low %vm918_vm4, %vm914_vm12  ;;  %vm925_vm4 = vcmp.eq.s32.totalorder %v6468_v18, %v5043_v35  ;;  %v4738_v50 = vpack.i.bf16 %v2187_v62, %v2203_v8 }
 0x1b9   :  { %v6699_v6 = vpop.permute.xlu1 %487  ;;  %4262 = vmatprep.subr.msk.bf16.mxu0 %vm4261_vm8, %v4784_v41  ;;  %4518 = vmatprep.subr.msk.bf16.mxu1 %vm4517_vm2, %v4784_v41  ;;  %vm4265_vm7 = vmpackc.low %vm916_vm3, %vm912_vm15  ;;  %vm924_vm8 = vcmp.eq.s32.totalorder %v6468_v18, %v5031_v30  ;;  %vm926_vm2 = vcmp.eq.s32.totalorder %v6468_v18, %v5034_v32  ;;  %vm923_vm3 = vcmp.eq.s32.totalorder %v6468_v18, %v5022_v27  ;;  %v2207_v18 = vld [vmem:[%s7261_s1 + $0x3e0] sm:$0xff]  ;;  %s4785_s1 = smov [#allocation2]  }
 0x1ba   :  { %vm4267_vm11 = vmpackc.low %vm915_vm13, %vm911_vm10  ;;  %vm922_vm13 = vcmp.eq.s32.totalorder %v5923_v26, %v5034_v32  ;;  %vm919_vm15 = vcmp.eq.s32.totalorder %v5923_v26, %v5022_v27  ;;  %vm921_vm12 = vcmp.eq.s32.totalorder %v5923_v26, %v5043_v35  ;;  %s3049_s14 = sshll.u32 %s4785_s1, 4  ;;  %s3050_s14 = int_to_ptr.vmem [resolvable:$true] %s3049_s14 }
 0x1bb   :  { %4735 = vxpose.xlu1.b32.cont [7/16] (narrow) %v4734_v37, 8  ;;  %vm4523_vm1 = vmpackc.low %vm917_vm9, %vm913_vm6  ;;  %vm928_vm6 = vcmp.eq.s32.totalorder %v5969_v31, %v5031_v30  ;;  %s4759_s15 = scalar_lea.vmem %s3050_s14, 512  ;;  %p4764_p1 = scmp.lt.s32.totalorder %s3050_s14, %s3050_s14 }
 0x1bc   :  { %4264 = vmatpush1.bf16.msk.msra.mxu0 %vm4263_vm14, %v4784_v41  ;;  %4520 = vmatpush1.bf16.msk.msra.mxu1 %vm4519_vm0, %v4784_v41  ;;  %vm920_vm14 = vcmp.eq.s32.totalorder %v5923_v26, %v5031_v30  ;;  %vm4525_vm9 = vmpackc.low %vm926_vm2, %vm922_vm13  ;;  %vm933_vm2 = vcmp.eq.s32.totalorder %v6502_v24, %v5043_v35  ;;  %vm929_vm13 = vcmp.eq.s32.totalorder %v5969_v31, %v5043_v35  ;;  %p4760_p0 = scmp.ne.s32.totalorder %s3050_s14, %s4759_s15  ;;  %p4765_p2 = scmp.lt.s32.totalorder %s4759_s15, %s4759_s15 }
 0x1bd   :  { %v6733_v51 = vpop.permute.xlu1 %493  ;;  %4266 = vmatprep.subr.msk.bf16.mxu0 %vm4265_vm7, %v4784_v41  ;;  %4522 = vmatprep.subr.msk.bf16.mxu1 %vm4521_vm5, %v4784_v41  ;;  %vm4269_vm0 = vmpackc.low %vm924_vm8, %vm920_vm14  ;;  %vm932_vm7 = vcmp.eq.s32.totalorder %v6502_v24, %v5031_v30  ;;  %vm934_vm5 = vcmp.eq.s32.totalorder %v6502_v24, %v5034_v32 }
 0x1be   :  { %vm4271_vm10 = vmpackc.low %vm923_vm3, %vm919_vm15  ;;  %p4766_p3 = por %p4765_p2, %p4764_p1 }
 0x1bf   :  { %4737 = vxpose.xlu1.b32.cont [8/16] (narrow) %v4736_v43, 8  ;;  %vm4527_vm8 = vmpackc.low %vm925_vm4, %vm921_vm12  ;;  %vm927_vm4 = vcmp.eq.s32.totalorder %v5969_v31, %v5022_v27 }
 0x1c0   :  { %4268 = vmatpush1.bf16.msk.msra.mxu0 %vm4267_vm11, %v4784_v41  ;;  %4524 = vmatpush1.bf16.msk.msra.mxu1 %vm4523_vm1, %v4784_v41  ;;  %vm931_vm11 = vcmp.eq.s32.totalorder %v6502_v24, %v5022_v27  ;;  %vm4273_vm3 = vmpackc.low %vm932_vm7, %vm928_vm6  ;;  %vm930_vm1 = vcmp.eq.s32.totalorder %v5969_v31, %v5034_v32  ;;  %vm939_vm7 = vcmp.eq.s32.totalorder %v6546_v34, %v5022_v27  ;;  %p4767_p4 = pnand %p4766_p3, %p4760_p0 }
 0x1c1   :  { %v6767_v0 = vpop.permute.xlu1 %499  ;;  %4270 = vmatprep.subr.msk.bf16.mxu0 %vm4269_vm0, %v4784_v41  ;;  %4526 = vmatprep.subr.msk.bf16.mxu1 %vm4525_vm9, %v4784_v41  ;;  %vm4529_vm14 = vmpackc.low %vm934_vm5, %vm930_vm1  ;;  %vm940_vm0 = vcmp.eq.s32.totalorder %v6546_v34, %v5031_v30  ;;  %vm942_vm9 = vcmp.eq.s32.totalorder %v6546_v34, %v5034_v32  ;;  %v4742_v31 = vpack.i.bf16 %v2189_v12, %v2205_v7 }
 0x1c2   :  { %vm4275_vm15 = vmpackc.low %vm931_vm11, %vm927_vm4  ;;  %vm941_vm5 = vcmp.eq.s32.totalorder %v6546_v34, %v5043_v35  ;;  %vm938_vm6 = vcmp.eq.s32.totalorder %v6020_v29, %v5034_v32  ;;  %vm935_vm11 = vcmp.eq.s32.totalorder %v6020_v29, %v5022_v27  ;;  %vm937_vm1 = vcmp.eq.s32.totalorder %v6020_v29, %v5043_v35 }
 0x1c3   :  { %4739 = vxpose.xlu1.b32.cont [9/16] (narrow) %v4738_v50, 8  ;;  %v4717_v26 = vpop.trf.xlu0  ;;  %vm4531_vm12 = vmpackc.low %vm933_vm2, %vm929_vm13  ;;  %vm950_vm4 = vcmp.eq.s32.totalorder %v6576_v46, %v5034_v32 }
 0x1c4   :  { %v4721_v16 = vunpack.i.h.bf16 %v4717_v26  ;;  %v4718_v19 = vunpack.i.l.bf16 %v4717_v26  ;;  %4272 = vmatpush1.bf16.msk.msra.mxu0 %vm4271_vm10, %v4784_v41  ;;  %4528 = vmatpush1.bf16.msk.msra.mxu1 %vm4527_vm8, %v4784_v41  ;;  %vm936_vm10 = vcmp.eq.s32.totalorder %v6020_v29, %v5031_v30  ;;  %vm4533_vm2 = vmpackc.low %vm942_vm9, %vm938_vm6  ;;  %v4744_v29 = vpack.i.bf16 %v2190_v5, %v2206_v55 }
 0x1c5   :  { %v6800_v11 = vpop.permute.xlu1 %502  ;;  %4274 = vmatprep.subr.msk.bf16.mxu0 %vm4273_vm3, %v4784_v41  ;;  %4530 = vmatprep.subr.msk.bf16.mxu1 %vm4529_vm14, %v4784_v41  ;;  %vm4277_vm8 = vmpackc.low %vm940_vm0, %vm936_vm10  ;;  %vm948_vm3 = vcmp.eq.s32.totalorder %v6576_v46, %v5031_v30  ;;  %vm947_vm0 = vcmp.eq.s32.totalorder %v6576_v46, %v5022_v27  ;;  %vm949_vm9 = vcmp.eq.s32.totalorder %v6576_v46, %v5043_v35 }
 0x1c6   :  { %2673 = vmatprep.mubr.f32.mxu0 %v4718_v19  ;;  %2957 = vmatprep.mubr.f32.mxu1 %v4718_v19  ;;  %vm4279_vm14 = vmpackc.low %vm939_vm7, %vm935_vm11  ;;  %vm943_vm10 = vcmp.eq.s32.totalorder %v6066_v36, %v5022_v27  ;;  %vm945_vm6 = vcmp.eq.s32.totalorder %v6066_v36, %v5043_v35 }
 0x1c7   :  { %4741 = vxpose.xlu1.b32.cont [10/16] (narrow) %v4740_v4, 8  ;;  %2674 = vmatmul.mubr.f32.vlgmr.msra.gmra.mrb[0].mxu0 %v4721_v16  ;;  %vm4535_vm13 = vmpackc.low %vm941_vm5, %vm937_vm1 }
 0x1c8   :  { %4276 = vmatpush1.bf16.msk.msra.mxu0 %vm4275_vm15, %v4784_v41  ;;  %2958 = vmatmul.mubr.f32.vlgmr.msra.gmra.mrb[0].mxu1 %v4721_v16  ;;  %vm944_vm15 = vcmp.eq.s32.totalorder %v6066_v36, %v5031_v30  ;;  %vm4283_vm11 = vmpackc.low %vm947_vm0, %vm943_vm10 }
 0x1c9   :  { %4532 = vmatpush1.bf16.msk.msra.mxu1 %vm4531_vm12, %v4784_v41  ;;  %v6837_v1 = vpop.permute.xlu1 %505  ;;  %4278 = vmatprep.subr.msk.bf16.mxu0 %vm4277_vm8, %v4784_v41  ;;  %vm4281_vm7 = vmpackc.low %vm948_vm3, %vm944_vm15  ;;  %vm946_vm12 = vcmp.eq.s32.totalorder %v6066_v36, %v5034_v32  ;;  %vm956_vm8 = vcmp.eq.s32.totalorder %v6595_v47, %v5031_v30  ;;  %vm955_vm3 = vcmp.eq.s32.totalorder %v6595_v47, %v5022_v27 }
 0x1ca   :  { %4534 = vmatprep.subr.msk.bf16.mxu1 %vm4533_vm2, %v4784_v41  ;;  %vm4537_vm5 = vmpackc.low %vm950_vm4, %vm946_vm12  ;;  %vm958_vm2 = vcmp.eq.s32.totalorder %v6595_v47, %v5034_v32  ;;  %v4746_v36 = vpack.i.bf16 %v2191_v48, %v2207_v18  ;;  %vm957_vm4 = vcmp.eq.s32.totalorder %v6595_v47, %v5043_v35  ;;  %vm951_vm15 = vcmp.eq.s32.totalorder %v6113_v58, %v5022_v27 }
 0x1cb   :  { %4743 = vxpose.xlu1.b32.cont [11/16] (narrow) %v4742_v31, 8  ;;  %vm4539_vm1 = vmpackc.low %vm949_vm9, %vm945_vm6  ;;  %vm953_vm12 = vcmp.eq.s32.totalorder %v6113_v58, %v5043_v35 }
 0x1cc   :  { %4280 = vmatpush1.bf16.msk.msra.mxu0 %vm4279_vm14, %v4784_v41  ;;  %vm952_vm14 = vcmp.eq.s32.totalorder %v6113_v58, %v5031_v30  ;;  %vm4287_vm10 = vmpackc.low %vm955_vm3, %vm951_vm15 }
 0x1cd   :  { %4536 = vmatpush1.bf16.msk.msra.mxu1 %vm4535_vm13, %v4784_v41  ;;  %v6874_v3 = vpop.permute.xlu1 %508  ;;  %4282 = vmatprep.subr.msk.bf16.mxu0 %vm4281_vm7, %v4784_v41  ;;  %vm4285_vm0 = vmpackc.low %vm956_vm8, %vm952_vm14  ;;  %vm954_vm13 = vcmp.eq.s32.totalorder %v6113_v58, %v5034_v32  ;;  %vm964_vm7 = vcmp.eq.s32.totalorder %v6631_v53, %v5031_v30  ;;  %vm963_vm8 = vcmp.eq.s32.totalorder %v6631_v53, %v5022_v27 }
 0x1ce   :  { %4538 = vmatprep.subr.msk.bf16.mxu1 %vm4537_vm5, %v4784_v41  ;;  %vm4541_vm9 = vmpackc.low %vm958_vm2, %vm954_vm13  ;;  %vm966_vm5 = vcmp.eq.s32.totalorder %v6631_v53, %v5034_v32  ;;  %v4748_v58 = vpack.i.bf16 %v2192_v54, %v2208_v25  ;;  %vm965_vm2 = vcmp.eq.s32.totalorder %v6631_v53, %v5043_v35  ;;  %vm959_vm14 = vcmp.eq.s32.totalorder %v6141_v45, %v5022_v27 }
 0x1cf   :  { %4745 = vxpose.xlu1.b32.cont [12/16] (narrow) %v4744_v29, 8  ;;  %vm4543_vm6 = vmpackc.low %vm957_vm4, %vm953_vm12  ;;  %vm961_vm13 = vcmp.eq.s32.totalorder %v6141_v45, %v5043_v35 }
 0x1d0   :  { %4284 = vmatpush1.bf16.msk.msra.mxu0 %vm4283_vm11, %v4784_v41  ;;  %vm960_vm11 = vcmp.eq.s32.totalorder %v6141_v45, %v5031_v30  ;;  %vm4291_vm15 = vmpackc.low %vm963_vm8, %vm959_vm14 }
 0x1d1   :  { %4540 = vmatpush1.bf16.msk.msra.mxu1 %vm4539_vm1, %v4784_v41  ;;  %v6911_v24 = vpop.permute.xlu1 %511  ;;  %4286 = vmatprep.subr.msk.bf16.mxu0 %vm4285_vm0, %v4784_v41  ;;  %vm4289_vm3 = vmpackc.low %vm964_vm7, %vm960_vm11  ;;  %vm962_vm1 = vcmp.eq.s32.totalorder %v6141_v45, %v5034_v32  ;;  %vm972_vm0 = vcmp.eq.s32.totalorder %v6665_v33, %v5031_v30  ;;  %vm971_vm7 = vcmp.eq.s32.totalorder %v6665_v33, %v5022_v27 }
 0x1d2   :  { %4542 = vmatprep.subr.msk.bf16.mxu1 %vm4541_vm9, %v4784_v41  ;;  %vm4545_vm4 = vmpackc.low %vm966_vm5, %vm962_vm1  ;;  %vm974_vm9 = vcmp.eq.s32.totalorder %v6665_v33, %v5034_v32  ;;  %v4750_v45 = vpack.i.bf16 %v2193_v57, %v2209_v28  ;;  %vm973_vm5 = vcmp.eq.s32.totalorder %v6665_v33, %v5043_v35  ;;  %vm967_vm11 = vcmp.eq.s32.totalorder %v6165_v21, %v5022_v27 }
 0x1d3   :  { %4747 = vxpose.xlu1.b32.cont [13/16] (narrow) %v4746_v36, 8  ;;  %vm4547_vm12 = vmpackc.low %vm965_vm2, %vm961_vm13  ;;  %vm969_vm1 = vcmp.eq.s32.totalorder %v6165_v21, %v5043_v35 }
 0x1d4   :  { %4288 = vmatpush1.bf16.msk.msra.mxu0 %vm4287_vm10, %v4784_v41  ;;  %vm968_vm10 = vcmp.eq.s32.totalorder %v6165_v21, %v5031_v30  ;;  %vm4295_vm14 = vmpackc.low %vm971_vm7, %vm967_vm11 }
 0x1d5   :  { %4544 = vmatpush1.bf16.msk.msra.mxu1 %vm4543_vm6, %v4784_v41  ;;  %v6948_v38 = vpop.permute.xlu1 %514  ;;  %4290 = vmatprep.subr.msk.bf16.mxu0 %vm4289_vm3, %v4784_v41  ;;  %vm4293_vm8 = vmpackc.low %vm972_vm0, %vm968_vm10  ;;  %vm970_vm6 = vcmp.eq.s32.totalorder %v6165_v21, %v5034_v32  ;;  %vm980_vm3 = vcmp.eq.s32.totalorder %v6699_v6, %v5031_v30  ;;  %vm979_vm0 = vcmp.eq.s32.totalorder %v6699_v6, %v5022_v27 }
 0x1d6   :  { %4546 = vmatprep.subr.msk.bf16.mxu1 %vm4545_vm4, %v4784_v41  ;;  %vm4549_vm2 = vmpackc.low %vm974_vm9, %vm970_vm6  ;;  %vm982_vm4 = vcmp.eq.s32.totalorder %v6699_v6, %v5034_v32  ;;  %v4752_v21 = vpack.i.bf16 %v2194_v14, %v2210_v10  ;;  %vm981_vm9 = vcmp.eq.s32.totalorder %v6699_v6, %v5043_v35  ;;  %vm975_vm10 = vcmp.eq.s32.totalorder %v6178_v40, %v5022_v27 }
 0x1d7   :  { %4749 = vxpose.xlu1.b32.cont [14/16] (narrow) %v4748_v58, 8  ;;  %vm4551_vm13 = vmpackc.low %vm973_vm5, %vm969_vm1  ;;  %vm977_vm6 = vcmp.eq.s32.totalorder %v6178_v40, %v5043_v35 }
 0x1d8   :  { %4292 = vmatpush1.bf16.msk.msra.mxu0 %vm4291_vm15, %v4784_v41  ;;  %vm976_vm15 = vcmp.eq.s32.totalorder %v6178_v40, %v5031_v30  ;;  %vm4299_vm11 = vmpackc.low %vm979_vm0, %vm975_vm10 }
 0x1d9   :  { %4548 = vmatpush1.bf16.msk.msra.mxu1 %vm4547_vm12, %v4784_v41  ;;  %v6985_v34 = vpop.permute.xlu1 %517  ;;  %4294 = vmatprep.subr.msk.bf16.mxu0 %vm4293_vm8, %v4784_v41  ;;  %vm4297_vm7 = vmpackc.low %vm980_vm3, %vm976_vm15  ;;  %vm978_vm12 = vcmp.eq.s32.totalorder %v6178_v40, %v5034_v32  ;;  %vm988_vm8 = vcmp.eq.s32.totalorder %v6733_v51, %v5031_v30  ;;  %vm987_vm3 = vcmp.eq.s32.totalorder %v6733_v51, %v5022_v27 }
 0x1da   :  { %4550 = vmatprep.subr.msk.bf16.mxu1 %vm4549_vm2, %v4784_v41  ;;  %vm4553_vm5 = vmpackc.low %vm982_vm4, %vm978_vm12  ;;  %vm990_vm2 = vcmp.eq.s32.totalorder %v6733_v51, %v5034_v32  ;;  %vm989_vm4 = vcmp.eq.s32.totalorder %v6733_v51, %v5043_v35  ;;  %vm983_vm15 = vcmp.eq.s32.totalorder %v6202_v20, %v5022_v27  ;;  %vm985_vm12 = vcmp.eq.s32.totalorder %v6202_v20, %v5043_v35 }
 0x1db   :  { %4751 = vxpose.xlu1.b32.cont [15/16] (narrow) %v4750_v45, 8  ;;  %vm4555_vm1 = vmpackc.low %vm981_vm9, %vm977_vm6 }
 0x1dc   :  { %4296 = vmatpush1.bf16.msk.msra.mxu0 %vm4295_vm14, %v4784_v41  ;;  %vm984_vm14 = vcmp.eq.s32.totalorder %v6202_v20, %v5031_v30  ;;  %vm4303_vm10 = vmpackc.low %vm987_vm3, %vm983_vm15  ;;  %vm994_vm3 = vcmp.eq.s32.totalorder %v6210_v2, %v5034_v32 }
 0x1dd   :  { %4552 = vmatpush1.bf16.msk.msra.mxu1 %vm4551_vm13, %v4784_v41  ;;  %v7016_v49 = vpop.permute.xlu1 %520  ;;  %4298 = vmatprep.subr.msk.bf16.mxu0 %vm4297_vm7, %v4784_v41  ;;  %vm4301_vm0 = vmpackc.low %vm988_vm8, %vm984_vm14  ;;  %vm986_vm13 = vcmp.eq.s32.totalorder %v6202_v20, %v5034_v32  ;;  %vm996_vm7 = vcmp.eq.s32.totalorder %v6767_v0, %v5031_v30  ;;  %vm995_vm8 = vcmp.eq.s32.totalorder %v6767_v0, %v5022_v27 }
 0x1de   :  { %4554 = vmatprep.subr.msk.bf16.mxu1 %vm4553_vm5, %v4784_v41  ;;  %vm4557_vm9 = vmpackc.low %vm990_vm2, %vm986_vm13  ;;  %vm998_vm5 = vcmp.eq.s32.totalorder %v6767_v0, %v5034_v32  ;;  %vm997_vm2 = vcmp.eq.s32.totalorder %v6767_v0, %v5043_v35  ;;  %vm991_vm14 = vcmp.eq.s32.totalorder %v6210_v2, %v5022_v27  ;;  %vm993_vm13 = vcmp.eq.s32.totalorder %v6210_v2, %v5043_v35 }
 0x1df   :  { %4753 = vxpose.xlu1.b32.end [16/16] (narrow) %v4752_v21, 8  ;;  %vm4559_vm6 = vmpackc.low %vm989_vm4, %vm985_vm12 }
 0x1e0   :  { %4300 = vmatpush1.bf16.msk.msra.mxu0 %vm4299_vm11, %v4784_v41  ;;  %vm992_vm11 = vcmp.eq.s32.totalorder %v6210_v2, %v5031_v30  ;;  %vm4561_vm4 = vmpackc.low %vm998_vm5, %vm994_vm3  ;;  %vm1005_vm5 = vcmp.eq.s32.totalorder %v6837_v1, %v5043_v35  ;;  %vm1001_vm3 = vcmp.eq.s32.totalorder %v6800_v11, %v5043_v35 }
 0x1e1   :  { %4556 = vmatpush1.bf16.msk.msra.mxu1 %vm4555_vm1, %v4784_v41  ;;  %v7044_v40 = vpop.permute.xlu1 %523  ;;  %4302 = vmatprep.subr.msk.bf16.mxu0 %vm4301_vm0, %v4784_v41  ;;  %vm4305_vm1 = vmpackc.low %vm996_vm7, %vm992_vm11  ;;  %vm1004_vm0 = vcmp.eq.s32.totalorder %v6837_v1, %v5031_v30  ;;  %vm1003_vm7 = vcmp.eq.s32.totalorder %v6837_v1, %v5022_v27  ;;  %vm999_vm11 = vcmp.eq.s32.totalorder %v6800_v11, %v5022_v27 }
 0x1e2   :  { %4558 = vmatprep.subr.msk.bf16.mxu1 %vm4557_vm9, %v4784_v41  ;;  %vm4307_vm15 = vmpackc.low %vm995_vm8, %vm991_vm14  ;;  %vm1006_vm9 = vcmp.eq.s32.totalorder %v6837_v1, %v5034_v32  ;;  %vm1002_vm8 = vcmp.eq.s32.totalorder %v6800_v11, %v5034_v32 }
 0x1e3   :  { %vm4563_vm12 = vmpackc.low %vm997_vm2, %vm993_vm13 }
 0x1e4   :  { %4304 = vmatpush1.bf16.msk.msra.mxu0 %vm4303_vm10, %v4784_v41  ;;  %vm1000_vm10 = vcmp.eq.s32.totalorder %v6800_v11, %v5031_v30  ;;  %vm4565_vm2 = vmpackc.low %vm1006_vm9, %vm1002_vm8  ;;  %vm1013_vm9 = vcmp.eq.s32.totalorder %v6911_v24, %v5043_v35  ;;  %vm1009_vm8 = vcmp.eq.s32.totalorder %v6874_v3, %v5043_v35 }
 0x1e5   :  { %4560 = vmatpush1.bf16.msk.msra.mxu1 %vm4559_vm6, %v4784_v41  ;;  %v7072_v20 = vpop.permute.xlu1 %526  ;;  %4306 = vmatprep.subr.msk.bf16.mxu0 %vm4305_vm1, %v4784_v41  ;;  %vm4309_vm6 = vmpackc.low %vm1004_vm0, %vm1000_vm10  ;;  %vm1012_vm1 = vcmp.eq.s32.totalorder %v6911_v24, %v5031_v30  ;;  %vm1011_vm0 = vcmp.eq.s32.totalorder %v6911_v24, %v5022_v27  ;;  %vm1007_vm10 = vcmp.eq.s32.totalorder %v6874_v3, %v5022_v27 }
 0x1e6   :  { %4562 = vmatprep.subr.msk.bf16.mxu1 %vm4561_vm4, %v4784_v41  ;;  %vm4311_vm14 = vmpackc.low %vm1003_vm7, %vm999_vm11  ;;  %vm1014_vm4 = vcmp.eq.s32.totalorder %v6911_v24, %v5034_v32  ;;  %vm1010_vm7 = vcmp.eq.s32.totalorder %v6874_v3, %v5034_v32 }
 0x1e7   :  { %vm4567_vm13 = vmpackc.low %vm1005_vm5, %vm1001_vm3 }
 0x1e8   :  { %4308 = vmatpush1.bf16.msk.msra.mxu0 %vm4307_vm15, %v4784_v41  ;;  %vm1008_vm15 = vcmp.eq.s32.totalorder %v6874_v3, %v5031_v30  ;;  %vm4569_vm5 = vmpackc.low %vm1014_vm4, %vm1010_vm7  ;;  %vm1021_vm4 = vcmp.eq.s32.totalorder %v6985_v34, %v5043_v35  ;;  %vm1017_vm7 = vcmp.eq.s32.totalorder %v6948_v38, %v5043_v35 }
 0x1e9   :  { %4564 = vmatpush1.bf16.msk.msra.mxu1 %vm4563_vm12, %v4784_v41  ;;  %v7100_v2 = vpop.permute.xlu1 %529  ;;  %4310 = vmatprep.subr.msk.bf16.mxu0 %vm4309_vm6, %v4784_v41  ;;  %vm4313_vm12 = vmpackc.low %vm1012_vm1, %vm1008_vm15  ;;  %vm1020_vm6 = vcmp.eq.s32.totalorder %v6985_v34, %v5031_v30  ;;  %vm1019_vm1 = vcmp.eq.s32.totalorder %v6985_v34, %v5022_v27  ;;  %vm1015_vm15 = vcmp.eq.s32.totalorder %v6948_v38, %v5022_v27 }
 0x1ea   :  { %4566 = vmatprep.subr.msk.bf16.mxu1 %vm4565_vm2, %v4784_v41  ;;  %vm4315_vm11 = vmpackc.low %vm1011_vm0, %vm1007_vm10  ;;  %vm1022_vm2 = vcmp.eq.s32.totalorder %v6985_v34, %v5034_v32  ;;  %vm1018_vm0 = vcmp.eq.s32.totalorder %v6948_v38, %v5034_v32 }
 0x1eb   :  { %vm4571_vm3 = vmpackc.low %vm1013_vm9, %vm1009_vm8 }
 0x1ec   :  { %4312 = vmatpush1.bf16.msk.msra.mxu0 %vm4311_vm14, %v4784_v41  ;;  %vm1016_vm14 = vcmp.eq.s32.totalorder %v6948_v38, %v5031_v30  ;;  %vm4573_vm9 = vmpackc.low %vm1022_vm2, %vm1018_vm0  ;;  %vm1029_vm2 = vcmp.eq.s32.totalorder %v7044_v40, %v5043_v35  ;;  %vm1025_vm0 = vcmp.eq.s32.totalorder %v7016_v49, %v5043_v35 }
 0x1ed   :  { %4568 = vmatpush1.bf16.msk.msra.mxu1 %vm4567_vm13, %v4784_v41  ;;  %v7128_v60 = vpop.permute.xlu1 %532  ;;  %4314 = vmatprep.subr.msk.bf16.mxu0 %vm4313_vm12, %v4784_v41  ;;  %vm4317_vm13 = vmpackc.low %vm1020_vm6, %vm1016_vm14  ;;  %vm1028_vm12 = vcmp.eq.s32.totalorder %v7044_v40, %v5031_v30  ;;  %vm1027_vm6 = vcmp.eq.s32.totalorder %v7044_v40, %v5022_v27  ;;  %vm1023_vm14 = vcmp.eq.s32.totalorder %v7016_v49, %v5022_v27 }
 0x1ee   :  { %4570 = vmatprep.subr.msk.bf16.mxu1 %vm4569_vm5, %v4784_v41  ;;  %vm4319_vm10 = vmpackc.low %vm1019_vm1, %vm1015_vm15  ;;  %vm1030_vm5 = vcmp.eq.s32.totalorder %v7044_v40, %v5034_v32  ;;  %vm1026_vm1 = vcmp.eq.s32.totalorder %v7016_v49, %v5034_v32 }
 0x1ef   :  { %vm4575_vm8 = vmpackc.low %vm1021_vm4, %vm1017_vm7 }
 0x1f0   :  { %4316 = vmatpush1.bf16.msk.msra.mxu0 %vm4315_vm11, %v4784_v41  ;;  %vm1024_vm11 = vcmp.eq.s32.totalorder %v7016_v49, %v5031_v30  ;;  %vm4577_vm4 = vmpackc.low %vm1030_vm5, %vm1026_vm1  ;;  %vm1037_vm5 = vcmp.eq.s32.totalorder %v7100_v2, %v5043_v35  ;;  %vm1033_vm1 = vcmp.eq.s32.totalorder %v7072_v20, %v5043_v35 }
 0x1f1   :  { %4572 = vmatpush1.bf16.msk.msra.mxu1 %vm4571_vm3, %v4784_v41  ;;  %v536_v39 = vpop.permute.xlu1 %535  ;;  %4318 = vmatprep.subr.msk.bf16.mxu0 %vm4317_vm13, %v4784_v41  ;;  %vm4321_vm3 = vmpackc.low %vm1028_vm12, %vm1024_vm11  ;;  %vm1036_vm13 = vcmp.eq.s32.totalorder %v7100_v2, %v5031_v30  ;;  %vm1035_vm12 = vcmp.eq.s32.totalorder %v7100_v2, %v5022_v27  ;;  %vm1031_vm11 = vcmp.eq.s32.totalorder %v7072_v20, %v5022_v27 }
 0x1f2   :  { %4574 = vmatprep.subr.msk.bf16.mxu1 %vm4573_vm9, %v4784_v41  ;;  %vm4323_vm15 = vmpackc.low %vm1027_vm6, %vm1023_vm14  ;;  %vm1038_vm9 = vcmp.eq.s32.totalorder %v7100_v2, %v5034_v32  ;;  %vm1034_vm6 = vcmp.eq.s32.totalorder %v7072_v20, %v5034_v32 }
 0x1f3   :  { %vm4579_vm7 = vmpackc.low %vm1029_vm2, %vm1025_vm0 }
 0x1f4   :  { %4320 = vmatpush1.bf16.msk.msra.mxu0 %vm4319_vm10, %v4784_v41  ;;  %vm1032_vm10 = vcmp.eq.s32.totalorder %v7072_v20, %v5031_v30  ;;  %vm4581_vm2 = vmpackc.low %vm1038_vm9, %vm1034_vm6  ;;  %vm1045_vm9 = vcmp.eq.s32.totalorder %v536_v39, %v5043_v35  ;;  %vm1041_vm6 = vcmp.eq.s32.totalorder %v7128_v60, %v5043_v35 }
 0x1f5   :  { %4576 = vmatpush1.bf16.msk.msra.mxu1 %vm4575_vm8, %v4784_v41  ;;  %v539_v46 = vpop.permute.xlu1 %538  ;;  %4322 = vmatprep.subr.msk.bf16.mxu0 %vm4321_vm3, %v4784_v41  ;;  %vm4325_vm8 = vmpackc.low %vm1036_vm13, %vm1032_vm10  ;;  %vm1044_vm3 = vcmp.eq.s32.totalorder %v536_v39, %v5031_v30  ;;  %vm1043_vm13 = vcmp.eq.s32.totalorder %v536_v39, %v5022_v27  ;;  %vm1042_vm10 = vcmp.eq.s32.totalorder %v7128_v60, %v5034_v32 }
 0x1f6   :  { %4578 = vmatprep.subr.msk.bf16.mxu1 %vm4577_vm4, %v4784_v41  ;;  %vm4327_vm14 = vmpackc.low %vm1035_vm12, %vm1031_vm11  ;;  %vm1046_vm4 = vcmp.eq.s32.totalorder %v536_v39, %v5034_v32  ;;  %vm1039_vm12 = vcmp.eq.s32.totalorder %v7128_v60, %v5022_v27 }
 0x1f7   :  { %vm4583_vm0 = vmpackc.low %vm1037_vm5, %vm1033_vm1  ;;  %vm1048_vm1 = vcmp.eq.s32.totalorder %v539_v46, %v5031_v30 }
 0x1f8   :  { %4324 = vmatpush1.bf16.msk.msra.mxu0 %vm4323_vm15, %v4784_v41  ;;  %vm1040_vm15 = vcmp.eq.s32.totalorder %v7128_v60, %v5031_v30  ;;  %vm4331_vm11 = vmpackc.low %vm1043_vm13, %vm1039_vm12  ;;  %vm1047_vm13 = vcmp.eq.s32.totalorder %v539_v46, %v5022_v27 }
 0x1f9   :  { %4580 = vmatpush1.bf16.msk.msra.mxu1 %vm4579_vm7, %v4784_v41  ;;  %4326 = vmatprep.subr.msk.bf16.mxu0 %vm4325_vm8, %v4784_v41  ;;  %v542_v13 = vpop.permute.xlu1 %541  ;;  %vm4329_vm7 = vmpackc.low %vm1044_vm3, %vm1040_vm15 }
 0x1fa   :  { %4582 = vmatprep.subr.msk.bf16.mxu1 %vm4581_vm2, %v4784_v41  ;;  %vm4585_vm8 = vmpackc.low %vm1046_vm4, %vm1042_vm10  ;;  %vm1052_vm5 = vcmp.eq.s32.totalorder %v542_v13, %v5031_v30  ;;  %vm1054_vm2 = vcmp.eq.s32.totalorder %v542_v13, %v5034_v32  ;;  %vm1050_vm4 = vcmp.eq.s32.totalorder %v539_v46, %v5034_v32  ;;  %vm1053_vm15 = vcmp.eq.s32.totalorder %v542_v13, %v5043_v35 }
 0x1fb   :  { %vm4587_vm3 = vmpackc.low %vm1045_vm9, %vm1041_vm6  ;;  %vm1049_vm9 = vcmp.eq.s32.totalorder %v539_v46, %v5043_v35 }
 0x1fc   :  { %4328 = vmatpush1.bf16.msk.msra.mxu0 %vm4327_vm14, %v4784_v41  ;;  %vm1051_vm14 = vcmp.eq.s32.totalorder %v542_v13, %v5022_v27  ;;  %vm4591_vm12 = vmpackc.low %vm1053_vm15, %vm1049_vm9 }
 0x1fd   :  { %4584 = vmatpush1.bf16.msk.msra.mxu1 %vm4583_vm0, %v4784_v41  ;;  %4330 = vmatprep.subr.msk.bf16.mxu0 %vm4329_vm7, %v4784_v41  ;;  %vm4333_vm0 = vmpackc.low %vm1052_vm5, %vm1048_vm1 }
 0x1fe   :  { %4586 = vmatprep.subr.msk.bf16.mxu1 %vm4585_vm8, %v4784_v41  ;;  %vm4589_vm7 = vmpackc.low %vm1054_vm2, %vm1050_vm4 }
 0x1ff   :  { %vm4335_vm10 = vmpackc.low %vm1051_vm14, %vm1047_vm13 }
 0x200   :  { %4332 = vmatpush1.bf16.msk.msra.mxu0 %vm4331_vm11, %v4784_v41 }
 0x201   :  { %4588 = vmatpush1.bf16.msk.msra.mxu1 %vm4587_vm3, %v4784_v41  ;;  %4334 = vmatprep.subr.msk.bf16.mxu0 %vm4333_vm0, %v4784_v41 }
 0x202   :  { %4590 = vmatprep.subr.msk.bf16.mxu1 %vm4589_vm7, %v4784_v41 }
 0x204   :  { %4336 = vmatpush1.bf16.msk.msra.mxu0 %vm4335_vm10, %v4784_v41 }
 0x205   :  { %4592 = vmatpush1.bf16.msk.msra.mxu1 %vm4591_vm12, %v4784_v41 }
 0x223   :  { %v4754_v30 = vpop.trf.xlu1 }
 0x224   :  { %v4758_v32 = vunpack.i.h.bf16 %v4754_v30  ;;  %v4755_v17 = vunpack.i.l.bf16 %v4754_v30 }
 0x226   :  { %2744 = vmatprep.mubr.f32.mxu0 %v4755_v17  ;;  %3028 = vmatprep.mubr.f32.mxu1 %v4755_v17 }
 0x227   :  { %2745 = vmatmul.mubr.f32.vlgmr.msra.gmra.mrb[0].mxu0 %v4758_v32  ;;  %3029 = vmatmul.mubr.f32.vlgmr.msra.gmra.mrb[0].mxu1 %v4758_v32 }
 0x2fa   :  { %v2746_v27 = vpop.f32.mrb[0].mxu0  ;;  %v3030_v59 = vpop.f32.mrb[0].mxu1 }
 0x2fb   :  { %v2748_v47 = vpop.f32.mrb[1].mxu0  ;;  %v3032_v63 = vpop.f32.mrb[1].mxu1  ;;  %3039 = vst [vmem:[#allocation2] sm:$0xff] %v2746_v27  ;;  %3041 = vst [vmem:[#allocation2 + $0x10] sm:$0xff] %v3030_v59 }
 0x2fc   :  { %3040 = vst [vmem:[#allocation2 + $0x8] sm:$0xff] %v2748_v47  ;;  %3042 = vst [vmem:[#allocation2 + $0x18] sm:$0xff] %v3032_v63 }
 0x2fd   :  { %4770 = shalt.err (!%p4767_p4)
}
 0x2fe   :  { %s4771_s18 = scalar_lea.hbm %s7262_s2, 512 }
 0x2ff   :  { %p4772_p5 = scmp.ne.s32.totalorder %s7262_s2, %s4771_s18  ;;  %p4775_p6 = scmp.lt.u32.totalorder %s4771_s18, %s7262_s2 }
 0x301   :  { %p4777_p7 = pnand %p4775_p6, %p4772_p5 }
 0x303   :  { %4780 = shalt.err (!%p4777_p7)
}
 0x304   :  { %3052 = dma.vmem_to_hbm [thread:$0]  %s3050_s14, 512, %s7262_s2, [#allocation3]  }
 0x305   :  { %4781 = dma.done.wait [#allocation3], 512  }
 0x306   :  { %4782 = vsyncadd [#allocation3], 4294966784 }
 0x307   :  { %3056 = vsyncpa [#allocation3], 1 }

</bundles_post_ra>
